<compile_context>
chip_gen: v7x
topology: tpu7x:2x2x1
jax: 0.10.0
libtpu: 0.0.40
codegen_flags: <defaults>
</compile_context>

<pallas_src>
import jax
import jax.numpy as jnp
import numpy as np
from jax.experimental import pallas as pl
from jax.experimental.pallas import tpu as pltpu


def _round_up(x, m):
    return ((x + m - 1) // m) * m


def _vmem_policy():
    """(tile_budget_bytes, vmem_limit_bytes, want_even_grid) for this TPU generation."""
    cap = None
    try:
        cap = int(pltpu.get_tpu_info().vmem_capacity_bytes)
    except Exception:
        cap = None
    kind = ""
    try:
        kind = jax.devices()[0].device_kind.lower()
    except Exception:
        pass
    # Megacore parts: 2 TensorCores split the grid; an odd step count idles one core.
    even = any(tag in kind for tag in ("v4", "v5p", "v7"))
    if cap is None:
        # Unknown part: assume the small (v7x-like, 64 MiB/TC) VMEM to stay safe.
        cap = (64 << 20) if ("v7" in kind or not kind) else (128 << 20)
    # Half of physical VMEM for the pipelined working set, scoped limit at 3/4 physical
    # (=> 64 MiB budget / 96 MiB limit on 128 MiB parts, 32 / 48 MiB on v7x).
    return cap // 2, (3 * cap) // 4, even


def _pick_batch_tile(batch, s8, s_out, d_p, h_p, in_bytes, sub,
                     requested=None, vmem_budget_bytes=64 << 20):
    """Pick a batch tile whose full working set fits the generation's VMEM budget."""
    # Resident operands (constant index_map): two weight tiles + biases + V (2 buffers).
    fixed = 2 * (2 * d_p * h_p * in_bytes + 3 * h_p * 4)
    # Per batch row: double-buffered input/context/bias blocks, double-buffered outputs,
    # plus the f32 intermediates (ctx_lin, u, u*v slab, att/alpha/softmax temporaries).
    per_row = (2 * (d_p + s8 * d_p) * in_bytes + 2 * s8 * 4   # inputs (x2 buffers)
               + 2 * (h_p + s_out) * 4                         # outputs (x2 buffers)
               + 4 * (3 * s8 * h_p + 3 * s8 + h_p))            # f32 intermediates
    per_row = int(per_row * 1.25)                               # compiler-internal headroom
    cap = max(1, (vmem_budget_bytes - fixed) // per_row)
    tb = requested if requested is not None else 256            # big tiles amortize ~0.35us/step
    tb = min(tb, cap, _round_up(batch, sub))
    # `sub` is the hard sublane floor; if cap < sub the vmem_limit below is raised to match.
    tb = max(sub, (tb // sub) * sub)
    return tb, fixed + tb * per_row


def attention_kernel(inp_ref, ctx_ref, bias_ref,
                     w_in_ref, b_in_ref, w_ctx_ref, b_ctx_ref, v_ref,
                     hs_ref, att_ref):
    TB, S8, Dp = ctx_ref.shape        # batch tile, seq padded to sublane quantum, padded D
    Hp = w_in_ref.shape[1]            # padded hidden dim (lane-dense)
    S_out = att_ref.shape[1]          # lane-dense att output width (>= S8)
    f32 = jnp.float32

    # input_linear on the MXU: (TB, Dp) @ (Dp, Hp) + b_in  -> f32 accumulate.
    inp_lin = jnp.dot(inp_ref[...], w_in_ref[...],
                      preferred_element_type=f32) + b_in_ref[...]                 # (TB, Hp)

    # context_linear (Conv1d, kernel=1) as one flat MXU matmul over all TB*S8 positions.
    # (TB, S8, Dp) -> (TB*S8, Dp) is layout preserving (S8 is a sublane-quantum multiple).
    ctx_flat = ctx_ref[...].reshape(TB * S8, Dp)
    ctx_lin = (jnp.dot(ctx_flat, w_ctx_ref[...], preferred_element_type=f32)
               + b_ctx_ref[...]).reshape(TB, S8, Hp)                              # (TB, S8, Hp) f32

    # u = tanh(inp_lin + ctx_lin): VPU add + EUP tanh, f32, on the small S8 slab only.
    u = jnp.tanh(ctx_lin + inp_lin[:, None, :])                                   # (TB, S8, Hp)

    # att = <V, u> over H on the VPU (broadcast multiply) + XLU lane reduction.
    # Exact f32 (no MXU bf16 emulation), no (TB*S,1)->(TB,S) relayout.
    v_row = v_ref[...].reshape(1, 1, Hp)
    att = jnp.sum(u * v_row, axis=-1) + bias_ref[...]                             # (TB, S8)

    # Masked softmax over the sequence axis; divide goes to the EUP slot.
    m = jnp.max(att, axis=-1, keepdims=True)
    e = jnp.exp(att - m)
    alpha = e * pl.reciprocal(jnp.sum(e, axis=-1, keepdims=True), approx=True)    # (TB, S8)

    # hidden_state = sum_s alpha * ctx_lin on VPU + XLU sublane reduction
    # (replaces the M=1-per-batch MXU einsum).
    hs_ref[...] = jnp.sum(alpha[:, :, None] * ctx_lin, axis=1)                    # (TB, Hp)

    # Lane-dense att writeback: fill the whole 128-wide block (padded lanes -> -inf),
    # then overwrite the S8 valid lanes.  The HBM writeback DMA is one dense block.
    if S_out == S8:
        att_ref[...] = att
    else:
        att_ref[...] = jnp.full((TB, S_out), -jnp.inf, f32)
        att_ref[:, :S8] = att


def prepare_params(params, *, compute_dtype=jnp.float32):
    """One-time (hoisted out of the hot path) padding / transposition of the weights."""
    H, D = params["w_in"].shape
    D_p, H_p = _round_up(D, 128), _round_up(H, 128)
    f32 = jnp.float32
    cdt = jnp.dtype(compute_dtype)
    w_in = jnp.zeros((D_p, H_p), cdt).at[:D, :H].set(params["w_in"].T.astype(cdt))
    w_ctx = jnp.zeros((D_p, H_p), cdt).at[:D, :H].set(params["w_ctx"].T.astype(cdt))
    b_in = jnp.zeros((1, H_p), f32).at[0, :H].set(params["b_in"].astype(f32))
    b_ctx = jnp.zeros((1, H_p), f32).at[0, :H].set(params["b_ctx"].astype(f32))
    v = jnp.zeros((1, H_p), f32).at[0, :H].set(params["v"].astype(f32))
    return dict(w_in=w_in, w_ctx=w_ctx, b_in=b_in, b_ctx=b_ctx, v=v,
                input_dim=D, hidden_dim=H, compute_dtype=cdt)


def attention_forward(prep, inp, context, mask, *, batch_tile=None):
    """inp: (B, D), context: (B, S, D), mask: (B, S) bool -> (hidden_state (B,H), att (B,S))."""
    B, S, D = context.shape
    H = prep["hidden_dim"]
    cdt = prep["compute_dtype"]
    f32 = jnp.float32
    in_bytes = cdt.itemsize
    sub = {4: 8, 2: 16, 1: 32}[in_bytes]        # sublane quantum for the compute dtype

    D_p, H_p = prep["w_in"].shape
    S8 = _round_up(S, sub)                       # compute / DMA seq pad (NOT 128)
    S_out = _round_up(S, 128)                    # lane-dense att output width

    budget, vmem_limit, even_grid = _vmem_policy()
    TB, est_bytes = _pick_batch_tile(B, S8, S_out, D_p, H_p, in_bytes, sub,
                                     requested=batch_tile, vmem_budget_bytes=budget)
    n_steps = pl.cdiv(B, TB)
    if even_grid and n_steps > 1 and n_steps % 2:
        n_steps += 1                             # balance the megacore split (v4/v5p/v7x)
    B_pad = n_steps * TB
    # Never trip the scoped limit if the minimum 8-row tile already exceeds the budget.
    vmem_limit = int(max(vmem_limit, int(est_bytes * 1.3) + (4 << 20)))

    inp_p = jnp.zeros((B_pad, D_p), cdt).at[:B, :D].set(inp.astype(cdt))
    ctx_p = jnp.zeros((B_pad, S8, D_p), cdt).at[:B, :S, :D].set(context.astype(cdt))

    # Additive mask bias: 0 where valid, -inf where masked / seq-padded; padded batch
    # rows are all-valid (avoids NaN softmax rows, they are sliced away).
    neg_inf = f32(-jnp.inf)
    bias = jnp.full((B_pad, S8), neg_inf, f32)
    bias = bias.at[:B, :S].set(jnp.where(mask, neg_inf, f32(0.0)))
    bias = bias.at[B:, :].set(0.0)

    row2 = lambda b: (b, 0)            # per-batch-tile 2-D blocks
    row3 = lambda b: (b, 0, 0)         # per-batch-tile 3-D blocks
    const2 = lambda b: (0, 0)          # weights: same block each step -> VMEM resident

    hs_full, att_full = pl.pallas_call(
        attention_kernel,
        out_shape=(jax.ShapeDtypeStruct((B_pad, H_p), f32),
                   jax.ShapeDtypeStruct((B_pad, S_out), f32)),
        grid=(n_steps,),
        in_specs=[
            pl.BlockSpec((TB, D_p), row2),           # input
            pl.BlockSpec((TB, S8, D_p), row3),       # context (seq padded to S8 only)
            pl.BlockSpec((TB, S8), row2),            # additive mask bias
            pl.BlockSpec((D_p, H_p), const2),        # W_in^T
            pl.BlockSpec((1, H_p), const2),          # b_in
            pl.BlockSpec((D_p, H_p), const2),        # W_ctx^T
            pl.BlockSpec((1, H_p), const2),          # b_ctx
            pl.BlockSpec((1, H_p), const2),          # V (row, used on the VPU)
        ],
        out_specs=(pl.BlockSpec((TB, H_p), row2),    # hidden_state (lane-dense H_p)
                   pl.BlockSpec((TB, S_out), row2)), # att          (lane-dense S_out)
        compiler_params=pltpu.CompilerParams(
            dimension_semantics=("parallel",),       # megacore-shard the batch axis
            vmem_limit_bytes=vmem_limit),
    )(inp_p, ctx_p, bias, prep["w_in"], prep["b_in"], prep["w_ctx"], prep["b_ctx"], prep["v"])

    return hs_full[:B, :H], att_full[:B, :S]


def attention_reference(params, inp, context, mask):
    # Pure-JAX mirror of the PyTorch forward (correctness check only).
    inp_lin = inp @ params["w_in"].T + params["b_in"]                              # (B, H)
    ctx_lin = jnp.einsum("bsd,hd->bsh", context, params["w_ctx"]) + params["b_ctx"]
    u = jnp.tanh(inp_lin[:, None, :] + ctx_lin)
    att = jnp.sum(u * params["v"][None, None, :], axis=-1)
    att = jnp.where(mask, -jnp.inf, att)
    alpha = jax.nn.softmax(att, axis=-1)
    hs = jnp.einsum("bsh,bs->bh", ctx_lin, alpha)
    return hs, att


if __name__ == "__main__":
    # Small shapes consistent with the module; B > batch_tile so the f32 run takes
    # two grid steps (exercises the blocked index_maps and the resident-weight path).
    B, S, D, H = 12, 8, 4, 32   # batch, seq_len, input_dim, hidden_dim

    key = jax.random.PRNGKey(0)
    k = jax.random.split(key, 8)
    params = {
        "w_in":  jax.random.uniform(k[0], (H, D), jnp.float32, -0.5, 0.5),  # nn.Linear weight
        "b_in":  jax.random.uniform(k[1], (H,),   jnp.float32, -0.5, 0.5),  # nn.Linear bias
        "w_ctx": jax.random.uniform(k[2], (H, D), jnp.float32, -0.5, 0.5),  # Conv1d(k=1) weight
        "b_ctx": jax.random.uniform(k[3], (H,),   jnp.float32, -0.5, 0.5),  # Conv1d bias
        "v":     jax.random.uniform(k[4], (H,),   jnp.float32, -1.0, 1.0),  # V ~ U(-1, 1)
    }
    inp = jax.random.normal(k[5], (B, D), jnp.float32)
    context = jax.random.normal(k[6], (B, S, D), jnp.float32)
    mask = jax.random.bernoulli(k[7], 0.3, (B, S))
    mask = mask.at[:, 0].set(False)   # keep >=1 unmasked position per row (as in PyTorch use)

    hs_ref, att_ref = attention_reference(params, inp, context, mask)

    # --- f32 path (exact MXU-emulated f32 matmuls + exact f32 VPU V-dot) ------------
    prep32 = prepare_params(params)                     # hoisted: padded/transposed once
    hs, att = attention_forward(prep32, inp, context, mask, batch_tile=8)
    jax.block_until_ready((hs, att))
    # att is now bit-for-bit close to the f32 reference (V-dot on VPU); hidden_state
    # tolerance covers pl.reciprocal(approx=True) in the softmax normalization.
    np.testing.assert_allclose(np.asarray(att), np.asarray(att_ref), rtol=1e-3, atol=1e-3)
    np.testing.assert_allclose(np.asarray(hs), np.asarray(hs_ref), rtol=1e-2, atol=1e-2)

    # --- bf16 MXU-operand path (review item for v5e/v6e/v7x) -------------------------
    prep16 = prepare_params(params, compute_dtype=jnp.bfloat16)
    hs16, att16 = attention_forward(prep16, inp, context, mask, batch_tile=8)
    jax.block_until_ready((hs16, att16))
    np.testing.assert_allclose(np.asarray(att16), np.asarray(att_ref), rtol=5e-2, atol=5e-2)
    np.testing.assert_allclose(np.asarray(hs16), np.asarray(hs_ref), rtol=5e-2, atol=5e-2)

    print("KERNEL_OK")
</pallas_src>

<mosaic_0001>
module attributes {stable_mosaic.version = 11 : i64} {
  func.func @attention_kernel(%arg0: i32, %arg1: memref<8x128xf32, #tpu.memory_space<vmem>>, %arg2: memref<8x8x128xf32, #tpu.memory_space<vmem>>, %arg3: memref<8x8xf32, #tpu.memory_space<vmem>>, %arg4: memref<128x128xf32, #tpu.memory_space<vmem>>, %arg5: memref<1x128xf32, #tpu.memory_space<vmem>>, %arg6: memref<128x128xf32, #tpu.memory_space<vmem>>, %arg7: memref<1x128xf32, #tpu.memory_space<vmem>>, %arg8: memref<1x128xf32, #tpu.memory_space<vmem>>, %arg9: memref<8x128xf32, #tpu.memory_space<vmem>>, %arg10: memref<8x128xf32, #tpu.memory_space<vmem>>) attributes {dimension_semantics = [#tpu.dimension_semantics<parallel>], iteration_bounds = array<i64: 2>, scalar_prefetch = 0 : i64, scratch_operands = 0 : i64, tpu.core_type = #tpu.core_type<tc>, window_params = [{transform_indices = @transform_0, window_bounds = array<i64: 8, 128>}, {transform_indices = @transform_1, window_bounds = array<i64: 8, 8, 128>}, {transform_indices = @transform_2, window_bounds = array<i64: 8, 8>}, {pipeline_mode = #tpu.pipeline_mode<synchronous>, transform_indices = @transform_3, window_bounds = array<i64: 128, 128>}, {pipeline_mode = #tpu.pipeline_mode<synchronous>, transform_indices = @transform_4, window_bounds = array<i64: 1, 128>}, {pipeline_mode = #tpu.pipeline_mode<synchronous>, transform_indices = @transform_5, window_bounds = array<i64: 128, 128>}, {pipeline_mode = #tpu.pipeline_mode<synchronous>, transform_indices = @transform_6, window_bounds = array<i64: 1, 128>}, {pipeline_mode = #tpu.pipeline_mode<synchronous>, transform_indices = @transform_7, window_bounds = array<i64: 1, 128>}, {transform_indices = @transform_8, window_bounds = array<i64: 8, 128>}, {transform_indices = @transform_9, window_bounds = array<i64: 8, 128>}]} {
    %c0 = arith.constant 0 : index
    %c0_0 = arith.constant 0 : index
    %0 = vector.load %arg1[%c0, %c0_0] : memref<8x128xf32, #tpu.memory_space<vmem>>, vector<8x128xf32>
    %c0_1 = arith.constant 0 : index
    %c0_2 = arith.constant 0 : index
    %1 = vector.load %arg4[%c0_1, %c0_2] : memref<128x128xf32, #tpu.memory_space<vmem>>, vector<128x128xf32>
    %cst = arith.constant dense<0.000000e+00> : vector<8x128xf32>
    %2 = tpu.matmul %0, %1, %cst {dimension_numbers = #tpu.dot_dimension_numbers<[1], [0], [0], [1], [0, 0, 1, 1], [], []>} : vector<8x128xf32>, vector<128x128xf32>, vector<8x128xf32> -> vector<8x128xf32>
    %c0_3 = arith.constant 0 : index
    %c0_4 = arith.constant 0 : index
    %3 = vector.load %arg5[%c0_3, %c0_4] : memref<1x128xf32, #tpu.memory_space<vmem>>, vector<1x128xf32>
    %4 = vector.broadcast %3 : vector<1x128xf32> to vector<8x128xf32>
    %5 = arith.addf %2, %4 : vector<8x128xf32>
    %c0_5 = arith.constant 0 : index
    %c0_6 = arith.constant 0 : index
    %c0_7 = arith.constant 0 : index
    %6 = vector.load %arg2[%c0_5, %c0_6, %c0_7] : memref<8x8x128xf32, #tpu.memory_space<vmem>>, vector<8x8x128xf32>
    %7 = vector.shape_cast %6 : vector<8x8x128xf32> to vector<64x128xf32>
    %c0_8 = arith.constant 0 : index
    %c0_9 = arith.constant 0 : index
    %8 = vector.load %arg6[%c0_8, %c0_9] : memref<128x128xf32, #tpu.memory_space<vmem>>, vector<128x128xf32>
    %cst_10 = arith.constant dense<0.000000e+00> : vector<64x128xf32>
    %9 = tpu.matmul %7, %8, %cst_10 {dimension_numbers = #tpu.dot_dimension_numbers<[1], [0], [0], [1], [0, 0, 1, 1], [], []>} : vector<64x128xf32>, vector<128x128xf32>, vector<64x128xf32> -> vector<64x128xf32>
    %c0_11 = arith.constant 0 : index
    %c0_12 = arith.constant 0 : index
    %10 = vector.load %arg7[%c0_11, %c0_12] : memref<1x128xf32, #tpu.memory_space<vmem>>, vector<1x128xf32>
    %11 = vector.broadcast %10 : vector<1x128xf32> to vector<64x128xf32>
    %12 = arith.addf %9, %11 : vector<64x128xf32>
    %13 = vector.shape_cast %12 : vector<64x128xf32> to vector<8x8x128xf32>
    %14 = vector.shape_cast %5 : vector<8x128xf32> to vector<8x1x128xf32>
    %15 = vector.broadcast %14 : vector<8x1x128xf32> to vector<8x8x128xf32>
    %16 = arith.addf %13, %15 : vector<8x8x128xf32>
    %17 = math.tanh %16 : vector<8x8x128xf32>
    %c0_13 = arith.constant 0 : index
    %c0_14 = arith.constant 0 : index
    %18 = vector.load %arg8[%c0_13, %c0_14] : memref<1x128xf32, #tpu.memory_space<vmem>>, vector<1x128xf32>
    %19 = vector.shape_cast %18 : vector<1x128xf32> to vector<1x1x128xf32>
    %20 = vector.broadcast %19 : vector<1x1x128xf32> to vector<8x8x128xf32>
    %21 = arith.mulf %17, %20 : vector<8x8x128xf32>
    %cst_15 = arith.constant dense<0.000000e+00> : vector<8x8xf32>
    %22 = vector.multi_reduction <add>, %21, %cst_15 [2] : vector<8x8x128xf32> to vector<8x8xf32>
    %c0_16 = arith.constant 0 : index
    %c0_17 = arith.constant 0 : index
    %23 = vector.load %arg3[%c0_16, %c0_17] : memref<8x8xf32, #tpu.memory_space<vmem>>, vector<8x8xf32>
    %24 = arith.addf %22, %23 : vector<8x8xf32>
    %cst_18 = arith.constant dense<0xFF800000> : vector<8xf32>
    %25 = vector.multi_reduction <maximumf>, %24, %cst_18 [1] : vector<8x8xf32> to vector<8xf32>
    %26 = vector.shape_cast %25 : vector<8xf32> to vector<8x1xf32>
    %27 = vector.broadcast %26 : vector<8x1xf32> to vector<8x8xf32>
    %28 = arith.subf %24, %27 : vector<8x8xf32>
    %29 = math.exp %28 : vector<8x8xf32>
    %cst_19 = arith.constant dense<0.000000e+00> : vector<8xf32>
    %30 = vector.multi_reduction <add>, %29, %cst_19 [1] : vector<8x8xf32> to vector<8xf32>
    %31 = vector.shape_cast %30 : vector<8xf32> to vector<8x1xf32>
    %32 = tpu.reciprocal %31 {approx = true} : vector<8x1xf32> -> vector<8x1xf32>
    %33 = vector.broadcast %32 : vector<8x1xf32> to vector<8x8xf32>
    %34 = arith.mulf %29, %33 : vector<8x8xf32>
    %35 = vector.shape_cast %34 : vector<8x8xf32> to vector<8x8x1xf32>
    %36 = vector.broadcast %35 : vector<8x8x1xf32> to vector<8x8x128xf32>
    %37 = arith.mulf %36, %13 : vector<8x8x128xf32>
    %cst_20 = arith.constant dense<0.000000e+00> : vector<8x128xf32>
    %38 = vector.multi_reduction <add>, %37, %cst_20 [1] : vector<8x8x128xf32> to vector<8x128xf32>
    %c0_21 = arith.constant 0 : index
    %c0_22 = arith.constant 0 : index
    %39 = vector.load %arg9[%c0_21, %c0_22] : memref<8x128xf32, #tpu.memory_space<vmem>>, vector<8x128xf32>
    tpu.vector_store %arg9[%c0_21, %c0_22], %38 {strides = array<i32>} : memref<8x128xf32, #tpu.memory_space<vmem>>, vector<8x128xf32>,
    %cst_23 = arith.constant 0xFF800000 : f32
    %40 = vector.broadcast %cst_23 : f32 to vector<8x128xf32>
    %c0_24 = arith.constant 0 : index
    %c0_25 = arith.constant 0 : index
    %41 = vector.load %arg10[%c0_24, %c0_25] : memref<8x128xf32, #tpu.memory_space<vmem>>, vector<8x128xf32>
    tpu.vector_store %arg10[%c0_24, %c0_25], %40 {strides = array<i32>} : memref<8x128xf32, #tpu.memory_space<vmem>>, vector<8x128xf32>,
    %c0_26 = arith.constant 0 : index
    %c0_27 = arith.constant 0 : index
    %42 = vector.load %arg10[%c0_26, %c0_27] : memref<8x128xf32, #tpu.memory_space<vmem>>, vector<8x8xf32>
    tpu.vector_store %arg10[%c0_26, %c0_27], %24 {strides = array<i32>} : memref<8x128xf32, #tpu.memory_space<vmem>>, vector<8x8xf32>,
    return
  }
  func.func @transform_0(%arg0: i32) -> (i32, i32) {
    %c0_i32 = arith.constant 0 : i32
    %c0_i32_0 = arith.constant 0 : i32
    return %arg0, %c0_i32 : i32, i32
  }
  func.func @transform_1(%arg0: i32) -> (i32, i32, i32) {
    %c0_i32 = arith.constant 0 : i32
    %c0_i32_0 = arith.constant 0 : i32
    %c0_i32_1 = arith.constant 0 : i32
    return %arg0, %c0_i32, %c0_i32_0 : i32, i32, i32
  }
  func.func @transform_2(%arg0: i32) -> (i32, i32) {
    %c0_i32 = arith.constant 0 : i32
    %c0_i32_0 = arith.constant 0 : i32
    return %arg0, %c0_i32 : i32, i32
  }
  func.func @transform_3(%arg0: i32) -> (i32, i32) {
    %c0_i32 = arith.constant 0 : i32
    %c0_i32_0 = arith.constant 0 : i32
    %c0_i32_1 = arith.constant 0 : i32
    return %c0_i32, %c0_i32_0 : i32, i32
  }
  func.func @transform_4(%arg0: i32) -> (i32, i32) {
    %c0_i32 = arith.constant 0 : i32
    %c0_i32_0 = arith.constant 0 : i32
    %c0_i32_1 = arith.constant 0 : i32
    return %c0_i32, %c0_i32_0 : i32, i32
  }
  func.func @transform_5(%arg0: i32) -> (i32, i32) {
    %c0_i32 = arith.constant 0 : i32
    %c0_i32_0 = arith.constant 0 : i32
    %c0_i32_1 = arith.constant 0 : i32
    return %c0_i32, %c0_i32_0 : i32, i32
  }
  func.func @transform_6(%arg0: i32) -> (i32, i32) {
    %c0_i32 = arith.constant 0 : i32
    %c0_i32_0 = arith.constant 0 : i32
    %c0_i32_1 = arith.constant 0 : i32
    return %c0_i32, %c0_i32_0 : i32, i32
  }
  func.func @transform_7(%arg0: i32) -> (i32, i32) {
    %c0_i32 = arith.constant 0 : i32
    %c0_i32_0 = arith.constant 0 : i32
    %c0_i32_1 = arith.constant 0 : i32
    return %c0_i32, %c0_i32_0 : i32, i32
  }
  func.func @transform_8(%arg0: i32) -> (i32, i32) {
    %c0_i32 = arith.constant 0 : i32
    %c0_i32_0 = arith.constant 0 : i32
    return %arg0, %c0_i32 : i32, i32
  }
  func.func @transform_9(%arg0: i32) -> (i32, i32) {
    %c0_i32 = arith.constant 0 : i32
    %c0_i32_0 = arith.constant 0 : i32
    return %arg0, %c0_i32 : i32, i32
  }
}

</mosaic_0001>

<bundles_post_ra>
// kernel: tpu_custom_call.1
= control target key start
LH: loop header
LB: loop body
LE: loop exit
PB: predicated region body
PF: predicated region fallthrough
CT: control target
= control target key end

     0   :  { %s2954_s0 = inlined_call_operand.hbm [shape: f32[16,128], index: 0, kind: input, shape index: {}]   ;;  %s2955_s1 = inlined_call_operand.hbm [shape: f32[16,8,128], index: 1, kind: input, shape index: {}]   ;;  %s2956_s2 = inlined_call_operand.hbm [shape: f32[16,8], index: 2, kind: input, shape index: {}]   ;;  %s2957_s3 = inlined_call_operand.hbm [shape: f32[128,128], index: 3, kind: input, shape index: {}]   ;;  %s2958_s4 = inlined_call_operand.hbm [shape: f32[1,128], index: 4, kind: input, shape index: {}]   ;;  %s2959_s5 = inlined_call_operand.hbm [shape: f32[128,128], index: 5, kind: input, shape index: {}]   ;;  %s2960_s6 = inlined_call_operand.hbm [shape: f32[1,128], index: 6, kind: input, shape index: {}]   ;;  %s2961_s7 = inlined_call_operand.hbm [shape: f32[1,128], index: 7, kind: input, shape index: {}]   ;;  %s2962_s8 = inlined_call_operand.hbm [shape: f32[16,128], index: 8, kind: output, shape index: {0}]   ;;  %s2963_s9 = inlined_call_operand.hbm [shape: f32[16,128], index: 9, kind: output, shape index: {1}]  }
   0x1   :  { %2985 = sst [smem:[#allocation31_spill]] %s2955_s1 }
   0x2   :  { %2986 = sst [smem:[#allocation32_spill]] %s2957_s3 }
   0x3   :  { %2987 = sst [smem:[#allocation33_spill]] %s2959_s5 }
   0x4   :  { %2988 = sst [smem:[#allocation34_spill]] %s2962_s8 }
   0x5   :  { %2989 = sst [smem:[#allocation35_spill]] %s2963_s9 }
   0x6   :  { %15 = vsyncpa [#allocation3], 0 }
   0x7   :  { %17 = vsyncpa [#allocation3 + $0x1], 0 }
   0x8   :  { %18 = vsyncpa [#allocation6], 0 }
   0x9   :  { %20 = vsyncpa [#allocation6 + $0x1], 0 }
   0xa   :  { %21 = vsyncpa [#allocation9], 0 }
   0xb   :  { %22 = vsyncpa [#allocation12], 0 }
   0xc   :  { %23 = vsyncpa [#allocation15], 0 }
   0xd   :  { %24 = vsyncpa [#allocation4], 0 }
   0xe   :  { %26 = vsyncpa [#allocation4 + $0x1], 0 }
   0xf   :  { %27 = vsyncpa [#allocation18], 0 }
  0x10   :  { %29 = vsyncpa [#allocation18 + $0x1], 0  ;;  %s2339_s30 = smov 0   ;;  %s2341_s10 = smov 0  }
  0x11   :  { %s2343_s11 = smov 0   ;;  %s2345_s12 = smov 0  }
  0x12 LB: > { %2990 = sst [smem:[#allocation26_spill]] %s2257_s30  ;;  %s2271_s13 = smov [#allocation8]   ;;  %s2269_s12 = sphi %s2345_s12, %s3028_s12   ;;  %s2265_s11 = sphi %s2343_s11, %s3030_s11   ;;  %s2261_s10 = sphi %s2341_s10, %s3032_s10   ;;  %s2257_s30 = sphi %s2339_s30, %s3031_s30  }
  0x13   : > { %2991 = sst [smem:[#allocation27_spill]] %s2265_s11  ;;  %s287_s14 = sshll.u32 %s2271_s13, 4  ;;  %s2365_s14 = int_to_ptr.vmem [resolvable:$true] %s287_s14 }
  0x14   : > { %s2360_s15 = sadd.s32 4294967295, %s2269_s12   ;;  %p1558_p0 = scmp.ge.s32.totalorder %s2269_s12, 1 }
  0x15   : > { %p2970_p1 = scmp.eq.s32.totalorder %s2360_s15, 0  ;;  %p275_p2 = scmp.lt.s32.totalorder %s2269_s12, 3 }
  0x16   : > { %s2272_s17 = smov [#allocation11]   ;;  %s2994_s3 = sld [smem:[#allocation32_spill]] }
  0x17   : > { %p2367_p3 = pnand %p1558_p0, %p275_p2  ;;  %s311_s18 = sshll.u32 %s2272_s17, 4  ;;  %s2380_s18 = int_to_ptr.vmem [resolvable:$true] %s311_s18 }
  0x19   : > { %s2992_s16 = scalar_select %p2367_p3, 1, 0 }
  0x1a   : > { %p1799_p5 = pneg %p2367_p3 }
  0x1c   : > { %p2376_p6 = pnand %p1799_p5, %p2970_p1  ;;  %s1925_s22 = scalar_lea.hbm %s2994_s3, 2048 }
  0x1d   : > { %p1926_p7 = scmp.ne.s32.totalorder %s2994_s3, %s1925_s22  ;;  %p1932_p11 = scmp.lt.u32.totalorder %s1925_s22, %s2994_s3 }
  0x1e   : > { %s2993_s19 = scalar_select %p2376_p6, 1, 0 }
  0x1f   : > { %p2390_p8 = pneg %p2376_p6 }
  0x21   : > { %s2995_s25 = scalar_select %p2390_p8, 1, 0 }
  0x22   : > { %p1928_p9 = pnand %p2390_p8, %p1926_p7 }
  0x24   : > { %p1929_p10 = pneg %p1928_p9 }
  0x26   : > { %p1934_p12 = pnand %p1932_p11, %p1929_p10 }
  0x28   : > { %1937 = shalt.err (!%p1934_p12)
}
  0x29   : > { %s1938_s28 = scalar_lea.vmem %s2365_s14, 2048  ;;  %p1946_p5 = scmp.lt.s32.totalorder %s2365_s14, %s2365_s14 }
  0x2a   : > { %p1939_p13 = scmp.ne.s32.totalorder %s2365_s14, %s1938_s28  ;;  %p1947_p4 = scmp.lt.s32.totalorder %s1938_s28, %s1938_s28 }
  0x2c   : > { %p1941_p0 = pnand %p1939_p13, %p2390_p8  ;;  %p1948_p7 = por %p1947_p4, %p1946_p5 }
  0x2e   : > { %p1942_p2 = pneg %p1941_p0 }
  0x30   : > { %p1949_p9 = pnand %p1948_p7, %p1942_p2 }
  0x32   : > { %1952 = shalt.err (!%p1949_p9)
}
  0x33   : > { %s2965_s29 = smov 128   ;;  %s2966_s13 = smov 8  }
  0x34   : > { %1802 = dma.hbm_to_vmem [thread:$0]  (!%p2376_p6), %s2994_s3, 2048, %s2365_s14, [#allocation9], %s2965_s29, %s2965_s29, %s2966_s13  }
  0x35   : > { %s2996_s5 = sld [smem:[#allocation33_spill]] }
  0x3b   : > { %s1953_s23 = scalar_lea.hbm %s2996_s5, 2048 }
  0x3c   : > { %p1954_p4 = scmp.ne.s32.totalorder %s2996_s5, %s1953_s23  ;;  %p1960_p12 = scmp.lt.u32.totalorder %s1953_s23, %s2996_s5 }
  0x3e   : > { %p1956_p10 = pnand %p1954_p4, %p2390_p8 }
  0x40   : > { %p1957_p11 = pneg %p1956_p10 }
  0x42   : > { %p1962_p13 = pnand %p1960_p12, %p1957_p11 }
  0x44   : > { %1965 = shalt.err (!%p1962_p13)
}
  0x45   : > { %s1966_s14 = scalar_lea.vmem %s2380_s18, 2048  ;;  %p1974_p7 = scmp.lt.s32.totalorder %s2380_s18, %s2380_s18 }
  0x46   : > { %p1967_p0 = scmp.ne.s32.totalorder %s2380_s18, %s1966_s14  ;;  %p1975_p9 = scmp.lt.s32.totalorder %s1966_s14, %s1966_s14 }
  0x48   : > { %p1969_p2 = pnand %p1967_p0, %p2390_p8  ;;  %p1976_p4 = por %p1975_p9, %p1974_p7 }
  0x4a   : > { %p1970_p5 = pneg %p1969_p2 }
  0x4c   : > { %p1977_p10 = pnand %p1976_p4, %p1970_p5 }
  0x4e   : > { %1980 = shalt.err (!%p1977_p10)
}
  0x4f   : > { %1808 = dma.hbm_to_vmem [thread:$0]  (!%p2376_p6), %s2996_s5, 2048, %s2380_s18, [#allocation12], %s2965_s29, %s2965_s29, %s2966_s13  }
  0x50   : > { %s1557_s21 = sadd.s32 4294967294, %s2269_s12   ;;  %s2442_s22 = sadd.s32 1, %s2269_s12  }
  0x51   : > { %2997 = sst [smem:[#allocation28_spill]] %s2442_s22  ;;  %s39_s23 = ssub.s32 %s2269_s12, %s2442_s22 }
  0x52   : > { %s42_s24 = sadd.s32 1, %s2265_s11  ;;  %p40_p11 = scmp.eq.s32.totalorder %s39_s23, 0 }
  0x53   : > { %p49_p12 = scmp.ne.s32.totalorder %s2265_s11, %s2261_s10  ;;  %p50_p13 = scmp.eq.s32.totalorder %s2269_s12, 0 }
  0x54   : > { %p55_p0 = scmp.ne.s32.totalorder %s2261_s10, %s2257_s30  ;;  %p236_p7 = scmp.eq.s32.totalorder %s2360_s15, 1 }
  0x55   : > { %s2453_s26 = scalar_select %p40_p11, %s2265_s11, %s42_s24  }
  0x56   : > { %p51_p2 = por %p50_p13, %p49_p12  ;;  %p2457_p5 = por %p2970_p1, %p55_p0 }
  0x57   : > { %2998 = sst [smem:[#allocation29_spill]] %s2453_s26  ;;  %p242_p9 = scmp.eq.s32.totalorder %s1557_s21, 1 }
  0x58   : > { %s2999_s27 = scalar_select %p2457_p5, 1, 0 }
  0x59   : > { %p1837_p4 = scmp.lt.s32.totalorder %s2269_s12, 2  ;;  %s2464_s18 = sand.u32 1, %s2265_s11  }
  0x5a   : > { %p2466_p10 = por %p236_p7, %p49_p12  ;;  %p2470_p3 = por %p242_p9, %p55_p0 }
  0x5b   : > { %p2474_p11 = pnand %p1837_p4, %p51_p2  ;;  %s365_s20 = sand.u32 1, %s2269_s12  }
  0x5c   : > { %s3000_s28 = scalar_select %p2466_p10, 1, 0 }
  0x5d   : > { %s3001_s14 = scalar_select %p2470_p3, 1, 0 }
  0x5e   : > { %s3003_s17 = scalar_select %p2474_p11, 1, 0 }
  0x5f   : > { %3002 = sst [smem:[#allocation30_spill]] %s3001_s14  ;;  %s1567_s23 = sshll.u32 %s2464_s18, 6 }
  0x60   : > { %s1592_s21 = sshll.u32 %s2269_s12, 10  ;;  %s369_s24 = scalar_lea.vmem [#allocation5], %s1567_s23 }
  0x61   : > { %s376_s29 = sshll.u32 %s369_s24, 4  ;;  %s3004_s1 = sld [smem:[#allocation31_spill]]  ;;  %s2486_s29 = int_to_ptr.vmem [resolvable:$true] %s376_s29 }
  0x62   : > { %s2488_s26 = scalar_lea.sflag [#allocation6], %s365_s20  ;;  %p2494_p13 = pneg %p2474_p11 }
  0x64   : > { %s3005_s22 = scalar_select %p2494_p13, 1, 0 }
  0x67   : > { %s2484_s5 = scalar_lea.hbm %s3004_s1, %s1592_s21  ;;  %s1986_s23 = scalar_lea.hbm %s3004_s1, 2048 }
  0x68   : > { %s1981_s11 = scalar_lea.hbm %s2484_s5, 1024  ;;  %p1987_p7 = scmp.lt.u32.totalorder %s2484_s5, %s3004_s1 }
  0x69   : > { %p1982_p12 = scmp.ne.s32.totalorder %s2484_s5, %s1981_s11  ;;  %p1988_p9 = scmp.lt.u32.totalorder %s1986_s23, %s1981_s11 }
  0x6a   : > { %p1990_p1 = scmp.lt.u32.totalorder %s1981_s11, %s2484_s5 }
  0x6b   : > { %p1984_p0 = pnand %p2494_p13, %p1982_p12  ;;  %p1989_p4 = por %p1988_p9, %p1987_p7 }
  0x6d   : > { %p1985_p2 = pneg %p1984_p0  ;;  %p1991_p3 = por %p1990_p1, %p1989_p4 }
  0x6f   : > { %p1992_p10 = pnand %p1991_p3, %p1985_p2 }
  0x71   : > { %1995 = shalt.err (!%p1992_p10)
}
  0x72   : > { %s1996_s20 = scalar_lea.vmem %s2486_s29, 1024  ;;  %s2275_s3 = smov [#allocation5]  }
  0x73   : > { %p1997_p12 = scmp.ne.s32.totalorder %s2486_s29, %s1996_s20  ;;  %s2001_s13 = sshll.u32 %s2275_s3, 4  ;;  %s2002_s13 = int_to_ptr.vmem [resolvable:$false] %s2001_s13 }
  0x74   : > { %s2003_s21 = scalar_lea.vmem %s2002_s13, 2048  ;;  %p2004_p6 = scmp.lt.s32.totalorder %s2486_s29, %s2002_s13 }
  0x75   : > { %p1999_p0 = pnand %p1997_p12, %p2494_p13  ;;  %p2005_p8 = scmp.lt.s32.totalorder %s2003_s21, %s1996_s20 }
  0x77   : > { %p2000_p5 = pneg %p1999_p0  ;;  %p2006_p7 = por %p2005_p8, %p2004_p6 }
  0x79   : > { %p2007_p9 = pnand %p2006_p7, %p2000_p5 }
  0x7b   : > { %2010 = shalt.err (!%p2007_p9)
}
  0x7c   : > { %s3006_s11 = smov 8   ;;  %s3007_s23 = smov 128  }
  0x7d   : > { %1821 = dma.hbm_to_vmem [thread:$0]  (!%p2474_p11), %s2484_s5, 1024, %s2486_s29, %s2488_s26, %s3007_s23, %s3007_s23, %s3006_s11  }
  0x7e   : > { %s2276_s24 = smov [#allocation10]   ;;  %s2277_s3 = smov [#allocation13]  }
  0x7f   : > { %s301_s1 = sshll.u32 %s2276_s24, 4  ;;  %s325_s14 = sshll.u32 %s2277_s3, 4  ;;  %s302_s1 = int_to_ptr.vmem [resolvable:$true] %s301_s1  ;;  %s2521_s14 = int_to_ptr.vmem [resolvable:$true] %s325_s14 }
  0x80   : > { %s2011_s21 = scalar_lea.hbm %s2958_s4, 16  ;;  %p3008_p3 = scmp.ne.s32.totalorder %s2995_s25, 0 }
  0x81   : > { %p2012_p1 = scmp.ne.s32.totalorder %s2958_s4, %s2011_s21  ;;  %p2018_p5 = scmp.lt.u32.totalorder %s2011_s21, %s2958_s4 }
  0x83   : > { %p2014_p6 = pnand %p2012_p1, %p3008_p3 }
  0x85   : > { %p2015_p8 = pneg %p2014_p6 }
  0x87   : > { %p2020_p10 = pnand %p2018_p5, %p2015_p8 }
  0x89   : > { %2023 = shalt.err (!%p2020_p10)
}
  0x8a   : > { %s2024_s29 = scalar_lea.vmem %s302_s1, 16  ;;  %s2031_s11 = scalar_lea.vmem %s302_s1, 32 }
  0x8b   : > { %p2025_p2 = scmp.ne.s32.totalorder %s302_s1, %s2024_s29  ;;  %p2032_p0 = scmp.lt.s32.totalorder %s302_s1, %s302_s1 }
  0x8c   : > { %p2033_p7 = scmp.lt.s32.totalorder %s2031_s11, %s2024_s29 }
  0x8d   : > { %p2027_p4 = pnand %p2025_p2, %p3008_p3 }
  0x8e   : > { %p2034_p9 = por %p2033_p7, %p2032_p0 }
  0x8f   : > { %p2028_p12 = pneg %p2027_p4 }
  0x91   : > { %p2035_p11 = pnand %p2034_p9, %p2028_p12 }
  0x93   : > { %2038 = shalt.err (!%p2035_p11)
}
  0x94   : > { %p3009_p1 = scmp.ne.s32.totalorder %s2993_s19, 0  ;;  %s2039_s24 = scalar_lea.hbm %s2960_s6, 16 }
  0x95   : > { %p2040_p6 = scmp.ne.s32.totalorder %s2960_s6, %s2039_s24  ;;  %p2046_p11 = scmp.lt.u32.totalorder %s2039_s24, %s2960_s6 }
  0x96   : > { %1805 = dma.hbm_to_vmem [thread:$0]  (!%p3009_p1), %s2958_s4, 16, %s302_s1, [#allocation9]  }
  0x97   : > { %p2042_p8 = pnand %p2040_p6, %p3008_p3 }
  0x99   : > { %p2043_p5 = pneg %p2042_p8 }
  0x9b   : > { %p2048_p10 = pnand %p2046_p11, %p2043_p5 }
  0x9d   : > { %2051 = shalt.err (!%p2048_p10)
}
  0x9e   : > { %s2052_s1 = scalar_lea.vmem %s2521_s14, 16  ;;  %s2059_s5 = scalar_lea.vmem %s2521_s14, 32 }
  0x9f   : > { %p2053_p2 = scmp.ne.s32.totalorder %s2521_s14, %s2052_s1  ;;  %p2060_p0 = scmp.lt.s32.totalorder %s2521_s14, %s2521_s14 }
  0xa0   : > { %p2061_p7 = scmp.lt.s32.totalorder %s2059_s5, %s2052_s1 }
  0xa1   : > { %p2055_p4 = pnand %p2053_p2, %p3008_p3 }
  0xa2   : > { %p2062_p9 = por %p2061_p7, %p2060_p0 }
  0xa3   : > { %p2056_p12 = pneg %p2055_p4 }
  0xa5   : > { %p2063_p6 = pnand %p2062_p9, %p2056_p12 }
  0xa7   : > { %2066 = shalt.err (!%p2063_p6)
}
  0xa8   : > { %1811 = dma.hbm_to_vmem [thread:$0]  (!%p3009_p1), %s2960_s6, 16, %s2521_s14, [#allocation12]  }
  0xa9   : > { %s2278_s8 = smov [#allocation14]   ;;  %s1565_s9 = sshll.u32 %s2464_s18, 3 }
  0xaa   : > { %s336_s30 = sshll.u32 %s2278_s8, 4  ;;  %s2067_s3 = scalar_lea.hbm %s2961_s7, 16  ;;  %s337_s30 = int_to_ptr.vmem [resolvable:$true] %s336_s30 }
  0xab   : > { %p2068_p8 = scmp.ne.s32.totalorder %s2961_s7, %s2067_s3  ;;  %p2074_p10 = scmp.lt.u32.totalorder %s2067_s3, %s2961_s7 }
  0xad   : > { %p2070_p5 = pnand %p2068_p8, %p3008_p3 }
  0xaf   : > { %p2071_p11 = pneg %p2070_p5 }
  0xb1   : > { %p2076_p2 = pnand %p2074_p10, %p2071_p11 }
  0xb3   : > { %2079 = shalt.err (!%p2076_p2)
}
  0xb4   : > { %s2080_s14 = scalar_lea.vmem %s337_s30, 16  ;;  %s2087_s5 = scalar_lea.vmem %s337_s30, 32 }
  0xb5   : > { %p2081_p4 = scmp.ne.s32.totalorder %s337_s30, %s2080_s14  ;;  %p2088_p7 = scmp.lt.s32.totalorder %s337_s30, %s337_s30 }
  0xb6   : > { %p2089_p9 = scmp.lt.s32.totalorder %s2087_s5, %s2080_s14 }
  0xb7   : > { %p2083_p12 = pnand %p2081_p4, %p3008_p3 }
  0xb8   : > { %p2090_p6 = por %p2089_p9, %p2088_p7 }
  0xb9   : > { %p2084_p0 = pneg %p2083_p12 }
  0xbb   : > { %p2091_p13 = pnand %p2090_p6, %p2084_p0 }
  0xbd   : > { %2094 = shalt.err (!%p2091_p13)
}
  0xbe   : > { %1814 = dma.hbm_to_vmem [thread:$0]  (!%p3009_p1), %s2961_s7, 16, %s337_s30, [#allocation15]  }
  0xbf   : > { %s1566_s25 = sshll.u32 %s2269_s12, 7  ;;  %s351_s8 = scalar_lea.vmem [#allocation2], %s1565_s9 }
  0xc0   : > { %s358_s23 = sshll.u32 %s351_s8, 4  ;;  %s2592_s20 = scalar_lea.hbm %s2954_s0, %s1566_s25  ;;  %s359_s23 = int_to_ptr.vmem [resolvable:$true] %s358_s23 }
  0xc1   : > { %s348_s19 = scalar_lea.sflag [#allocation3], %s2464_s18  ;;  %s2095_s13 = scalar_lea.hbm %s2592_s20, 128 }
  0xc2   : > { %p2096_p13 = scmp.ne.s32.totalorder %s2592_s20, %s2095_s13  ;;  %p3010_p3 = scmp.ne.s32.totalorder %s3005_s22, 0 }
  0xc3   : > { %s2100_s1 = scalar_lea.hbm %s2954_s0, 256  ;;  %p2101_p5 = scmp.lt.u32.totalorder %s2592_s20, %s2954_s0 }
  0xc4   : > { %p2098_p1 = pnand %p2096_p13, %p3010_p3  ;;  %p2102_p11 = scmp.lt.u32.totalorder %s2100_s1, %s2095_s13 }
  0xc5   : > { %p2104_p2 = scmp.lt.u32.totalorder %s2095_s13, %s2592_s20 }
  0xc6   : > { %p2099_p8 = pneg %p2098_p1  ;;  %p2103_p10 = por %p2102_p11, %p2101_p5 }
  0xc8   : > { %p2105_p4 = por %p2104_p2, %p2103_p10 }
  0xca   : > { %p2106_p12 = pnand %p2105_p4, %p2099_p8 }
  0xcc   : > { %2109 = shalt.err (!%p2106_p12)
}
  0xcd   : > { %s2110_s29 = scalar_lea.vmem %s359_s23, 128  ;;  %s2279_s11 = smov [#allocation2]  }
  0xce   : > { %p2111_p0 = scmp.ne.s32.totalorder %s359_s23, %s2110_s29  ;;  %s2115_s8 = sshll.u32 %s2279_s11, 4  ;;  %s2116_s8 = int_to_ptr.vmem [resolvable:$false] %s2115_s8 }
  0xcf   : > { %s2117_s24 = scalar_lea.vmem %s2116_s8, 256  ;;  %p2118_p6 = scmp.lt.s32.totalorder %s359_s23, %s2116_s8 }
  0xd0   : > { %p2113_p7 = pnand %p2111_p0, %p3010_p3  ;;  %p2119_p13 = scmp.lt.s32.totalorder %s2117_s24, %s2110_s29 }
  0xd2   : > { %p2114_p9 = pneg %p2113_p7  ;;  %p2120_p1 = por %p2119_p13, %p2118_p6 }
  0xd4   : > { %p2121_p5 = pnand %p2120_p1, %p2114_p9 }
  0xd6   : > { %2124 = shalt.err (!%p2121_p5)
}
  0xd7   : > { %p3011_p11 = scmp.ne.s32.totalorder %s3003_s17, 0  ;;  %s2617_s30 = scalar_lea.hbm %s2956_s2, %s1566_s25 }
  0xd8   : > { %s390_s21 = scalar_lea.vmem [#allocation7], %s1565_s9  ;;  %s2125_s14 = scalar_lea.hbm %s2617_s30, 128 }
  0xd9   : > { %1818 = dma.hbm_to_vmem [thread:$0]  (!%p3011_p11), %s2592_s20, 128, %s359_s23, %s348_s19  }
  0xda   : > { %s397_s1 = sshll.u32 %s390_s21, 4  ;;  %p2126_p8 = scmp.ne.s32.totalorder %s2617_s30, %s2125_s14  ;;  %s398_s1 = int_to_ptr.vmem [resolvable:$true] %s397_s1 }
  0xdb   : > { %s2130_s19 = scalar_lea.hbm %s2956_s2, 256  ;;  %p2131_p4 = scmp.lt.u32.totalorder %s2617_s30, %s2956_s2 }
  0xdc   : > { %p2128_p10 = pnand %p2126_p8, %p3010_p3  ;;  %p2132_p12 = scmp.lt.u32.totalorder %s2130_s19, %s2125_s14 }
  0xdd   : > { %p2134_p7 = scmp.lt.u32.totalorder %s2125_s14, %s2617_s30 }
  0xde   : > { %p2129_p2 = pneg %p2128_p10  ;;  %p2133_p0 = por %p2132_p12, %p2131_p4 }
  0xe0   : > { %p2135_p9 = por %p2134_p7, %p2133_p0 }
  0xe2   : > { %p2136_p6 = pnand %p2135_p9, %p2129_p2 }
  0xe4   : > { %2139 = shalt.err (!%p2136_p6)
}
  0xe5   : > { %s2140_s18 = scalar_lea.vmem %s398_s1, 128  ;;  %s2280_s9 = smov [#allocation7]  }
  0xe6   : > { %p2141_p13 = scmp.ne.s32.totalorder %s398_s1, %s2140_s18  ;;  %s2145_s29 = sshll.u32 %s2280_s9, 4  ;;  %s2146_s29 = int_to_ptr.vmem [resolvable:$false] %s2145_s29 }
  0xe7   : > { %s2147_s11 = scalar_lea.vmem %s2146_s29, 256  ;;  %p2148_p8 = scmp.lt.s32.totalorder %s398_s1, %s2146_s29 }
  0xe8   : > { %p2143_p1 = pnand %p2141_p13, %p3010_p3  ;;  %p2149_p10 = scmp.lt.s32.totalorder %s2147_s11, %s2140_s18 }
  0xea   : > { %p2144_p5 = pneg %p2143_p1  ;;  %p2150_p11 = por %p2149_p10, %p2148_p8 }
  0xec   : > { %p2151_p4 = pnand %p2150_p11, %p2144_p5 }
  0xee   : > { %2154 = shalt.err (!%p2151_p4)
}
  0xef   : > { %p3012_p12 = scmp.ne.s32.totalorder %s3003_s17, 0  ;;  %p3013_p2 = scmp.ne.s32.totalorder %s2992_s16, 0 }
  0xf0   : > { %s2642_s22 = sand.u32 (!%p3013_p2), 1, %s2261_s10   ;;  %p3014_p3 = scmp.ne.s32.totalorder (!%p3013_p2), %s2999_s27, 0 }
  0xf1   : > { %1824 = dma.hbm_to_vmem [thread:$0]  (!%p3012_p12), %s2617_s30, 128, %s398_s1, %s2488_s26  }
  0xf2   : > { %406 = sbr.rel (%p3013_p2) target bundleno = 1485 (0x5cd), region = 52  ;;  %s2645_s8 = sshll.u32 (!%p3013_p2), %s2642_s22, 3 }
  0xf3   : > { %s409_s24 = scalar_lea.sflag (!%p3013_p2), [#allocation3], %s2642_s22  ;;  %s412_s3 = scalar_lea.vmem (!%p3013_p2), [#allocation2], %s2645_s8 }
  0xf9   : > { %2228 = dma.done.wait (%p3014_p3), %s409_s24, 128  }
  0xfa   : > { %2230 = vsyncadd (%p3014_p3), %s409_s24, 4294967168  ;;  %s417_s16 = sand.u32 1, %s2360_s15   ;;  %s1574_s26 = sshll.u32 %s2642_s22, 6 }
  0xfb   : > { %s418_s17 = scalar_lea.sflag [#allocation6], %s417_s16  ;;  %s2655_s13 = scalar_lea.vmem [#allocation5], %s1574_s26 }
  0xfc   : > { %2232 = dma.done.wait (%p3014_p3), %s418_s17, 1152  }
  0xfd   : > { %2234 = vsyncadd (%p3014_p3), %s418_s17, 4294966144  ;;  %s430_s30 = scalar_lea.vmem [#allocation7], %s2645_s8  ;;  %p3015_p11 = scmp.eq.s32.totalorder %s2360_s15, 0 }
  0xff   : > { %2236 = dma.done.wait (%p3015_p11), [#allocation9], 2064   ;;  %p3016_p0 = pmov %p3015_p11 }
 0x101   : > { %2238 = vsyncadd (%p3016_p0), [#allocation9], 4294965232  ;;  %p3017_p7 = pmov %p3016_p0 }
 0x102   : > { %p3018_p9 = pmov %p3016_p0 }
 0x103   : > { %2240 = dma.done.wait (%p3017_p7), [#allocation12], 2064  }
 0x104   : > { %2242 = vsyncadd (%p3018_p9), [#allocation12], 4294965232  ;;  %p3019_p6 = pmov %p3016_p0 }
 0x105   : > { %p3020_p13 = pmov %p3016_p0 }
 0x106   : > { %2244 = dma.done.wait (%p3019_p6), [#allocation15], 16  }
 0x107   : > { %2246 = vsyncadd (%p3020_p13), [#allocation15], 4294967280  ;;  %v2281_v0 = vmov 0.0|0.0   ;;  %vm2282_vm0 = vmmov 0   ;;  %v2283_v1 = vmov 0.0   ;;  %v502_v2 = vld [vmem:[#allocation8] sm:$0xff]  ;;  %v736_v12 = vlaneseq }
 0x108   : > { %1713 = vmatprep.subr.bf16.mxu0 %v2281_v0  ;;  %1666 = vmatprep.mubr.msk.f32.mxu0 %vm2282_vm0, %v2283_v1  ;;  %v503_v3 = vld [vmem:[#allocation8 + $0x8] sm:$0xff]  ;;  %v504_v7 = vld [vmem:[#allocation8 + $0x10] sm:$0xff]  ;;  %v505_v8 = vld [vmem:[#allocation8 + $0x18] sm:$0xff]  ;;  %s2797_s27 = scalar_lea.vmem [#allocation17], %s2645_s8  ;;  %vm1008_vm1 = vcmask 1041409   ;;  %vm1010_vm2 = vcmask 1042434  }
 0x109   : > { %v603_v4 = vld [vmem:[#allocation11] sm:$0xff]  ;;  %v1714_v5 = vpack.c.bf16 %v503_v3, %v502_v2  ;;  %v604_v6 = vld [vmem:[#allocation11 + $0x8] sm:$0xff]  ;;  %v605_v10 = vld [vmem:[#allocation11 + $0x10] sm:$0xff]  ;;  %v1717_v13 = vpack.c.bf16 %v505_v8, %v504_v7  ;;  %v2677_v20 = vshrl.u32 %v736_v12, 7  ;;  %vm1012_vm3 = vcmask 1043459   ;;  %s1588_s21 = sshll.u32 %s2360_s15, 7 }
 0x10a   : > { %v1737_v9 = vpack.c.bf16 %v604_v6, %v603_v4  ;;  %v606_v11 = vld [vmem:[#allocation11 + $0x18] sm:$0xff]  ;;  %v607_v15 = vld [vmem:[#allocation11 + $0x20] sm:$0xff]  ;;  %v608_v16 = vld [vmem:[#allocation11 + $0x28] sm:$0xff]  ;;  %vm1014_vm4 = vcmask 1044484   ;;  %vm1016_vm5 = vcmask 1045509   ;;  %vm1018_vm6 = vcmask 1046534  }
 0x10b   : > { %1715 = vmatpush3.bf16.msra.mxu0 %v1714_v5  ;;  %v1741_v14 = vpack.c.bf16 %v606_v11, %v605_v10  ;;  %v506_v17 = vld [vmem:[#allocation8 + $0x20] sm:$0xff]  ;;  %v507_v18 = vld [vmem:[#allocation8 + $0x28] sm:$0xff]  ;;  %v1745_v19 = vpack.c.bf16 %v608_v16, %v607_v15  ;;  %v609_v22 = vld [vmem:[#allocation11 + $0x30] sm:$0xff]  ;;  %v2681_v27 = vsub.s32 1, %v2677_v20  ;;  %v2684_v28 = vsub.s32 0, %v2677_v20  ;;  %s3021_s23 = sld [smem:[#allocation35_spill]] }
 0x10c   : > { %1738 = vmatprep.subr.bf16.mxu1 %v1737_v9  ;;  %1716 = vmatprep.subr.bf16.mxu0 %v2281_v0  ;;  %v1720_v21 = vpack.c.bf16 %v507_v18, %v506_v17  ;;  %v610_v23 = vld [vmem:[#allocation11 + $0x38] sm:$0xff]  ;;  %v508_v24 = vld [vmem:[#allocation8 + $0x30] sm:$0xff]  ;;  %v611_v30 = vld [vmem:[#allocation11 + $0x40] sm:$0xff]  ;;  %v2689_v35 = vsub.s32 2, %v2677_v20  ;;  %v2696_v37 = vsub.s32 4, %v2677_v20  ;;  %v2706_v47 = vsub.s32 3, %v2677_v20 }
 0x10d   : > { %1740 = vmatpush3.bf16.msra.mxu1 %v1737_v9  ;;  %v509_v25 = vld [vmem:[#allocation8 + $0x38] sm:$0xff]  ;;  %v1749_v26 = vpack.c.bf16 %v610_v23, %v609_v22  ;;  %v612_v31 = vld [vmem:[#allocation11 + $0x48] sm:$0xff]  ;;  %v510_v33 = vld [vmem:[#allocation8 + $0x40] sm:$0xff]  ;;  %v2714_v56 = vsub.s32 5, %v2677_v20  ;;  %v2284_v10 = vmov 1966171168  }
 0x10e   : > { %1742 = vmatprep.subr.bf16.mxu1 %v1741_v14  ;;  %v1723_v29 = vpack.c.bf16 %v509_v25, %v508_v24  ;;  %v595_v32 = vld [vmem:[%s2655_s13] sm:$0xff]  ;;  %v511_v34 = vld [vmem:[#allocation8 + $0x48] sm:$0xff]  ;;  %v1753_v38 = vpack.c.bf16 %v612_v31, %v611_v30  ;;  %v614_v43 = vld [vmem:[#allocation11 + $0x58] sm:$0xff]  ;;  %v734_v11 = vunpack.c.l.s4 %v2284_v10  ;;  %vm1020_vm7 = vcmask 1047559   ;;  %s1364_s19 = sshll.u32 %s2797_s27, 4  ;;  %s1338_s5 = scalar_lea.sflag [#allocation18], %s2642_s22  ;;  %s1365_s19 = int_to_ptr.vmem [resolvable:$true] %s1364_s19 }
 0x10f   : > { %1718 = vmatpush3.bf16.msra.mxu0 %v1717_v13  ;;  %1701 = vmatprep.mubr.f32.mxu1 %v595_v32  ;;  %v2693_v36 = vld [vmem:[%s430_s30] sm:$0xff]  ;;  %v1726_v41 = vpack.c.bf16 %v511_v34, %v510_v33  ;;  %v615_v51 = vld [vmem:[#allocation11 + $0x60] sm:$0xff]  ;;  %vm1023_vm8 = vcmask 64512   ;;  %s2155_s25 = scalar_lea.vmem %s1365_s19, 128  ;;  %p3022_p5 = scmp.ne.s32.totalorder %s3000_s28, 0 }
 0x110   : > { %1719 = vmatprep.subr.bf16.mxu0 %v2281_v0  ;;  %v880_v39 = vrot.slane %v2693_v36, %v2681_v27  ;;  %v873_v40 = vrot.slane %v2693_v36, %v2684_v28  ;;  %v613_v42 = vld [vmem:[#allocation11 + $0x50] sm:$0xff]  ;;  %v887_v46 = vrot.slane %v2693_v36, %v2689_v35  ;;  %v901_v48 = vrot.slane %v2693_v36, %v2696_v37  ;;  %v616_v52 = vld [vmem:[#allocation11 + $0x68] sm:$0xff]  ;;  %v514_v53 = vld [vmem:[#allocation8 + $0x60] sm:$0xff]  ;;  %p2156_p1 = scmp.ne.s32.totalorder %s1365_s19, %s2155_s25  ;;  %s2287_s18 = smov [#allocation17]  }
 0x111   : > { %1744 = vmatpush3.bf16.msra.mxu1 %v1741_v14  ;;  %v512_v44 = vld [vmem:[#allocation8 + $0x50] sm:$0xff]  ;;  %v513_v45 = vld [vmem:[#allocation8 + $0x58] sm:$0xff]  ;;  %v1757_v49 = vpack.c.bf16 %v614_v43, %v613_v42  ;;  %v515_v54 = vld [vmem:[#allocation8 + $0x68] sm:$0xff]  ;;  %v894_v55 = vrot.slane %v2693_v36, %v2706_v47  ;;  %v1761_v57 = vpack.c.bf16 %v616_v52, %v615_v51  ;;  %v908_v63 = vrot.slane %v2693_v36, %v2714_v56  ;;  %s2868_s20 = scalar_lea.hbm %s3021_s23, %s1588_s21  ;;  %s2159_s9 = sshll.u32 %s2287_s18, 4  ;;  %s2160_s9 = int_to_ptr.vmem [resolvable:$false] %s2159_s9 }
 0x112   : > { %1746 = vmatprep.subr.bf16.mxu1 %v1745_v19  ;;  %882 = vbcast.lane.b32.xlu1 %v880_v39, 256  ;;  %v1729_v50 = vpack.c.bf16 %v513_v45, %v512_v44  ;;  %v1732_v58 = vpack.c.bf16 %v515_v54, %v514_v53  ;;  %v617_v59 = vld [vmem:[#allocation11 + $0x70] sm:$0xff]  ;;  %v618_v60 = vld [vmem:[#allocation11 + $0x78] sm:$0xff]  ;;  %v598_v6 = vld [vmem:[%s2655_s13 + $0x18] sm:$0xff]  ;;  %v735_v13 = vunpack.c.0.s8 %v734_v11  ;;  %p2157_p8 = pnand %p2156_p1, %p3022_p5  ;;  %s2161_s29 = scalar_lea.vmem %s2160_s9, 256 }
 0x113   : > { %1721 = vmatpush3.bf16.msra.mxu0 %v1720_v21  ;;  %875 = vbcast.lane.b32.xlu0 %v873_v40, 256  ;;  %v516_v61 = vld [vmem:[#allocation8 + $0x70] sm:$0xff]  ;;  %v517_v62 = vld [vmem:[#allocation8 + $0x78] sm:$0xff]  ;;  %v1765_v1 = vpack.c.bf16 %v618_v60, %v617_v59  ;;  %v501_v3 = vld [vmem:[%s412_s3] sm:$0xff]  ;;  %p2162_p4 = scmp.lt.s32.totalorder %s1365_s19, %s2160_s9  ;;  %p2163_p12 = scmp.lt.s32.totalorder %s2161_s29, %s2155_s25 }
 0x114   : > { %1722 = vmatprep.subr.bf16.mxu0 %v2281_v0  ;;  %v1735_v2 = vpack.c.bf16 %v517_v62, %v516_v61  ;;  %v596_v4 = vld [vmem:[%s2655_s13 + $0x8] sm:$0xff]  ;;  %v597_v5 = vld [vmem:[%s2655_s13 + $0x10] sm:$0xff]  ;;  %v599_v7 = vld [vmem:[%s2655_s13 + $0x20] sm:$0xff]  ;;  %v738_v15 = vsub.s32 %v735_v13, %v2677_v20  ;;  %p2158_p10 = pneg %p2157_p8 }
 0x115   : > { %1748 = vmatpush3.bf16.msra.mxu1 %v1745_v19  ;;  %v601_v8 = vld [vmem:[%s2655_s13 + $0x30] sm:$0xff]  ;;  %v602_v9 = vld [vmem:[%s2655_s13 + $0x38] sm:$0xff]  ;;  %p2164_p2 = por %p2163_p12, %p2162_p4 }
 0x116   : > { %1750 = vmatprep.subr.bf16.mxu1 %v1749_v26  ;;  %889 = vbcast.lane.b32.xlu1 %v887_v46, 256  ;;  %v1583_v14 = vld [vmem:[#allocation10] ss:$0 sm:$0xff]  ;;  %v1584_v24 = vld [vmem:[#allocation13] ss:$0 sm:$0xff] }
 0x117   : > { %1724 = vmatpush3.bf16.msra.mxu0 %v1723_v29  ;;  %903 = vbcast.lane.b32.xlu0 %v901_v48, 256  ;;  %p2165_p3 = pnand %p2164_p2, %p2158_p10 }
 0x118   : > { %1725 = vmatprep.subr.bf16.mxu0 %v2281_v0 }
 0x119   : > { %1752 = vmatpush3.bf16.msra.mxu1 %v1749_v26 }
 0x11a   : > { %1754 = vmatprep.subr.bf16.mxu1 %v1753_v38  ;;  %896 = vbcast.lane.b32.xlu1 %v894_v55, 256 }
 0x11b   : > { %1727 = vmatpush3.bf16.msra.mxu0 %v1726_v41 }
 0x11c   : > { %1728 = vmatprep.subr.bf16.mxu0 %v2281_v0 }
 0x11d   : > { %1756 = vmatpush3.bf16.msra.mxu1 %v1753_v38 }
 0x11e   : > { %1758 = vmatprep.subr.bf16.mxu1 %v1757_v49  ;;  %910 = vbcast.lane.b32.xlu1 %v908_v63, 256 }
 0x11f   : > { %1730 = vmatpush3.bf16.msra.mxu0 %v1729_v50 }
 0x120   : > { %1731 = vmatprep.subr.bf16.mxu0 %v2281_v0 }
 0x121   : > { %1760 = vmatpush3.bf16.msra.mxu1 %v1757_v49 }
 0x122   : > { %1762 = vmatprep.subr.bf16.mxu1 %v1761_v57 }
 0x123   : > { %1733 = vmatpush3.bf16.msra.mxu0 %v1732_v58 }
 0x124   : > { %1734 = vmatprep.subr.bf16.mxu0 %v2281_v0  ;;  %v600_v0 = vld [vmem:[%s2655_s13 + $0x28] sm:$0xff] }
 0x125   : > { %1764 = vmatpush3.bf16.msra.mxu1 %v1761_v57 }
 0x126   : > { %1766 = vmatprep.subr.bf16.mxu1 %v1765_v1 }
 0x127   : > { %1736 = vmatpush3.bf16.msra.mxu0 %v1735_v2 }
 0x129   : > { %1768 = vmatpush3.bf16.msra.mxu1 %v1765_v1 }
 0x12a   : > { %1667 = vmatmul.mubr.f32.vlgmr.msra.gmra.mrb[0].mxu0 %v501_v3 }
 0x12c   : > { %1702 = vmatmul.mubr.f32.vlgmr.msra.gmra.mrb[0].mxu1 %v596_v4 }
 0x12d   : > { %1704 = vmatprep.mubr.f32.mxu1 %v597_v5 }
 0x130   : > { %1705 = vmatmul.mubr.f32.gmra.mrb[2].mxu1 %v598_v6 }
 0x131   : > { %1707 = vmatprep.mubr.f32.mxu1 %v599_v7 }
 0x134   : > { %1708 = vmatmul.mubr.f32.gmra.mrb[4].mxu1 %v600_v0 }
 0x135   : > { %1710 = vmatprep.mubr.f32.mxu1 %v601_v8  ;;  %v1585_v8 = vld [vmem:[#allocation14] ss:$0 sm:$0xff] }
 0x138   : > { %1711 = vmatmul.mubr.f32.gmra.mrb[6].mxu1 %v602_v9 }
 0x1fd   : > { %v591_v16 = vpop.f32.mrb[0].mxu0 }
 0x1fe   : > { %v592_v17 = vadd.f32 %v1583_v14, %v591_v16  ;;  %v1668_v18 = vpop.f32.mrb[1].mxu0 }
 0x1ff   : > { %v1703_v19 = vpop.f32.mrb[0].mxu1 }
 0x200   : > { %v732_v21 = vcombine.high %v592_v17, %v592_v17  ;;  %v739_v22 = vrot.slane %v592_v17, %v738_v15  ;;  %v692_v23 = vpop.f32.mrb[1].mxu1  ;;  %v2733_v39 = vadd.f32 %v1703_v19, %v1584_v24 }
 0x201   : > { %v2730_v33 = vadd.f32 %v1584_v24, %v692_v23 }
 0x202   : > { %v746_v25 = vrot.slane %v732_v21, %v738_v15  ;;  %v747_v26 = vcombine.high %v739_v22, %v739_v22  ;;  %v755_v29 = vrot.slane %v739_v22, %v738_v15 }
 0x203   : > { %v1706_v30 = vpop.f32.mrb[2].mxu1 }
 0x204   : > { %v748_v31 = vcombine.high %v746_v25, %v746_v25  ;;  %v769_v32 = vrot.slane %v747_v26, %v738_v15  ;;  %v784_v34 = vrot.slane %v755_v29, %v2684_v28  ;;  %v702_v38 = vpop.f32.mrb[3].mxu1  ;;  %v777_v41 = vcombine.high %v755_v29, %v755_v29 }
 0x205   : > { %v2735_v40 = vadd.f32 %v1584_v24, %v702_v38  ;;  %v762_v42 = vrot.slane %v746_v25, %v738_v15  ;;  %v2739_v48 = vadd.f32 %v1706_v30, %v1584_v24  ;;  %v2285_v30 = vmov 0  }
 0x206   : > { %v788_v43 = vrot.slane %v769_v32, %v2684_v28  ;;  %v821_v44 = vadd.f32 %v784_v34, %v2730_v33  ;;  %v779_v45 = vcombine.high %v769_v32, %v769_v32  ;;  %v776_v46 = vrot.slane %v748_v31, %v738_v15  ;;  %1889 = vset.pattern.permute.xlu0 %v2285_v30 }
 0x207   : > { %v792_v49 = vrot.slane %v777_v41, %v2684_v28  ;;  %v1709_v50 = vpop.f32.mrb[4].mxu1  ;;  %v800_v51 = vrot.slane %v762_v42, %v2684_v28  ;;  %v778_v52 = vcombine.high %v762_v42, %v762_v42  ;;  %1890 = vset.pattern.permute.xlu1 %v2285_v30  ;;  %v2763_v31 = vsub.s32 7, %v2677_v20  ;;  %v883_v41 = vpop.permute.xlu1 %882 }
 0x208   : > { %v822_v53 = vadd.f32 %v788_v43, %v2733_v39  ;;  %1891 = vtanh.f32 %v821_v44  ;;  %v796_v54 = vrot.slane %v779_v45, %v2684_v28  ;;  %v2745_v55 = vadd.f32 %v1709_v50, %v1584_v24  ;;  %v712_v57 = vpop.f32.mrb[5].mxu1  ;;  %v876_v43 = vpop.permute.xlu0 %875 }
 0x209   : > { %v823_v58 = vadd.f32 %v792_v49, %v2735_v40  ;;  %v804_v59 = vrot.slane %v776_v46, %v2684_v28  ;;  %v2749_v60 = vadd.f32 %v1584_v24, %v712_v57  ;;  %v780_v61 = vcombine.high %v776_v46, %v776_v46 }
 0x20a   : > { %1893 = vtanh.f32 %v822_v53  ;;  %v824_v62 = vadd.f32 %v796_v54, %v2739_v48  ;;  %v808_v4 = vrot.slane %v778_v52, %v2684_v28  ;;  %v2766_v32 = vsub.s32 6, %v2677_v20 }
 0x20b   : > { %1895 = vtanh.f32 %v823_v58  ;;  %v825_v63 = vadd.f32 %v800_v51, %v2749_v60  ;;  %v1712_v1 = vpop.f32.mrb[6].mxu1  ;;  %v826_v2 = vadd.f32 %v804_v59, %v2745_v55  ;;  %v812_v6 = vrot.slane %v780_v61, %v2684_v28  ;;  %v890_v42 = vpop.permute.xlu1 %889 }
 0x20c   : > { %v722_v3 = vpop.f32.mrb[7].mxu1  ;;  %1897 = vtanh.f32 %v824_v62  ;;  %v2755_v5 = vadd.f32 %v1712_v1, %v1584_v24  ;;  %v922_v34 = vrot.slane %v2693_v36, %v2763_v31  ;;  %v915_v38 = vrot.slane %v2693_v36, %v2766_v32  ;;  %v904_v45 = vpop.permute.xlu0 %903 }
 0x20d   : > { %v2758_v7 = vadd.f32 %v1584_v24, %v722_v3  ;;  %1899 = vtanh.f32 %v825_v63 }
 0x20e   : > { %1901 = vtanh.f32 %v826_v2  ;;  %v828_v9 = vadd.f32 %v812_v6, %v2755_v5 }
 0x20f   : > { %v827_v0 = vadd.f32 %v808_v4, %v2758_v7  ;;  %v897_v44 = vpop.permute.xlu1 %896 }
 0x211   : > { %1903 = vtanh.f32 %v827_v0  ;;  %v2286_v0 = vmov -inf  }
 0x212   : > { %v1892_v10 = vpop.eup %1891  ;;  %1905 = vtanh.f32 %v828_v9  ;;  %1330 = vst [vmem:[%s2797_s27] sm:$0xff] %v2286_v0 }
 0x213   : > { %v844_v11 = vmul.f32 %v1892_v10, %v1585_v8  ;;  %v911_v46 = vpop.permute.xlu1 %910 }
 0x214   : > { %v1894_v13 = vpop.eup %1893 }
 0x215   : > { %v1896_v14 = vpop.eup %1895  ;;  %852 = vadd.xlane.f32.xlu0 %v844_v11  ;;  %v845_v17 = vmul.f32 %v1894_v13, %v1585_v8 }
 0x216   : > { %v846_v15 = vmul.f32 %v1896_v14, %v1585_v8  ;;  %v1898_v16 = vpop.eup %1897 }
 0x217   : > { %v1900_v18 = vpop.eup %1899  ;;  %v847_v19 = vmul.f32 %v1898_v16, %v1585_v8 }
 0x218   : > { %856 = vadd.xlane.f32.xlu1 %v846_v15  ;;  %v1902_v21 = vpop.eup %1901  ;;  %v848_v22 = vmul.f32 %v1900_v18, %v1585_v8 }
 0x219   : > { %854 = vadd.xlane.f32.xlu0 %v845_v17  ;;  %v849_v24 = vmul.f32 %v1902_v21, %v1585_v8 }
 0x21b   : > { %v1904_v23 = vpop.eup %1903 }
 0x21c   : > { %858 = vadd.xlane.f32.xlu1 %v847_v19  ;;  %v1906_v25 = vpop.eup %1905  ;;  %v850_v26 = vmul.f32 %v1904_v23, %v1585_v8 }
 0x21d   : > { %860 = vadd.xlane.f32.xlu0 %v848_v22  ;;  %v851_v29 = vmul.f32 %v1906_v25, %v1585_v8  ;;  %v975_v8 = vand.u32 127, %v736_v12 }
 0x21f   : > { %v2802_v10 = vsub.s32 %v975_v8, %v2677_v20 }
 0x220   : > { %862 = vadd.xlane.f32.xlu1 %v849_v24 }
 0x221   : > { %864 = vadd.xlane.f32.xlu0 %v850_v26 }
 0x224   : > { %866 = vadd.xlane.f32.xlu1 %v851_v29 }
 0x235   : > { %924 = vbcast.lane.b32.xlu1 %v922_v34, 256 }
 0x237   : > { %917 = vbcast.lane.b32.xlu0 %v915_v38, 256 }
 0x2a2   : > { %v853_v49 = vpop.xlane.xlu0 %852 }
 0x2a3   : > { %v2772_v50 = vadd.f32 %v876_v43, %v853_v49 }
 0x2a5   : > { %v857_v51 = vpop.xlane.xlu1 %856  ;;  %951 = vperm.xlu0 %1889, %v2772_v50  }
 0x2a6   : > { %v855_v52 = vpop.xlane.xlu0 %854  ;;  %v2780_v58 = vadd.f32 %v890_v42, %v857_v51 }
 0x2a7   : > { %v2775_v53 = vadd.f32 %v883_v41, %v855_v52 }
 0x2a9   : > { %v859_v54 = vpop.xlane.xlu1 %858  ;;  %954 = vperm.xlu1 %1890, %v2775_v53  }
 0x2aa   : > { %v2778_v36 = vadd.f32 %v897_v44, %v859_v54  ;;  %v861_v57 = vpop.xlane.xlu0 %860 }
 0x2ab   : > { %v2786_v63 = vadd.f32 %v904_v45, %v861_v57 }
 0x2ac   : > { %960 = vperm.xlu0 %1889, %v2778_v36  }
 0x2ad   : > { %v863_v59 = vpop.xlane.xlu1 %862  ;;  %957 = vperm.xlu1 %1890, %v2780_v58  }
 0x2ae   : > { %v2784_v61 = vadd.f32 %v911_v46, %v863_v59  ;;  %v865_v62 = vpop.xlane.xlu0 %864 }
 0x2b0   : > { %966 = vperm.xlu0 %1889, %v2784_v61  }
 0x2b1   : > { %v867_v1 = vpop.xlane.xlu1 %866  ;;  %963 = vperm.xlu1 %1890, %v2786_v63  }
 0x2b2   : > { %v918_v2 = vpop.permute.xlu0 %917 }
 0x2b3   : > { %v2790_v3 = vadd.f32 %v918_v2, %v865_v62 }
 0x2b5   : > { %v925_v4 = vpop.permute.xlu1 %924  ;;  %969 = vperm.xlu1 %1890, %v2790_v3  }
 0x2b6   : > { %v2793_v6 = vadd.f32 %v925_v4, %v867_v1 }
 0x2b8   : > { %972 = vperm.xlu0 %1889, %v2793_v6  }
 0x324   : > { %v952_v9 = vpop.permute.xlu0 %951 }
 0x325   : > { %v979_v15 = vrot.slane %v952_v9, %v2802_v10 }
 0x328   : > { %v955_v11 = vpop.permute.xlu1 %954 }
 0x329   : > { %v983_v13 = vrot.slane %v955_v11, %v2802_v10 }
 0x32b   : > { %v961_v14 = vpop.permute.xlu0 %960  ;;  %v1009_v18 = vsel %vm1008_vm1, %v983_v13, %v979_v15 }
 0x32c   : > { %v958_v16 = vpop.permute.xlu1 %957  ;;  %v991_v12 = vrot.slane %v961_v14, %v2802_v10 }
 0x32d   : > { %v987_v17 = vrot.slane %v958_v16, %v2802_v10 }
 0x32f   : > { %v1011_v19 = vsel %vm1010_vm2, %v987_v17, %v1009_v18  ;;  %v967_v21 = vpop.permute.xlu0 %966 }
 0x330   : > { %v964_v20 = vpop.permute.xlu1 %963  ;;  %v1013_v23 = vsel %vm1012_vm3, %v991_v12, %v1011_v19  ;;  %v999_v25 = vrot.slane %v967_v21, %v2802_v10 }
 0x331   : > { %v995_v22 = vrot.slane %v964_v20, %v2802_v10 }
 0x333   : > { %v1015_v24 = vsel %vm1014_vm4, %v995_v22, %v1013_v23 }
 0x334   : > { %v970_v26 = vpop.permute.xlu1 %969  ;;  %v1017_v30 = vsel %vm1016_vm5, %v999_v25, %v1015_v24 }
 0x335   : > { %v1003_v29 = vrot.slane %v970_v26, %v2802_v10 }
 0x337   : > { %v973_v34 = vpop.permute.xlu0 %972  ;;  %v1019_v38 = vsel %vm1018_vm6, %v1003_v29, %v1017_v30 }
 0x338   : > { %v1007_v41 = vrot.slane %v973_v34, %v2802_v10 }
 0x33a   : > { %v1021_v42 = vsel %vm1020_vm7, %v1007_v41, %v1019_v38 }
 0x33b   : > { %v1024_v43 = vsel %vm1023_vm8, %v1021_v42, -inf  ;;  %1331 = vst.msk [vmem:[%s2797_s27] sm:$0xff] %vm1023_vm8, %v1021_v42 }
 0x33c   : > { %1025 = vmax.xlane.f32.xlu1 %v1024_v43 }
 0x3c9   : > { %v1026_v44 = vpop.xlane.xlu1 %1025 }
 0x3ca   : > { %v1031_v45 = vrot.slane %v1026_v44, %v2684_v28  ;;  %v1035_v46 = vrot.slane %v1026_v44, %v2681_v27  ;;  %v1039_v49 = vrot.slane %v1026_v44, %v2689_v35  ;;  %v1043_v57 = vrot.slane %v1026_v44, %v2706_v47 }
 0x3cb   : > { %v1047_v1 = vrot.slane %v1026_v44, %v2696_v37  ;;  %v1051_v0 = vrot.slane %v1026_v44, %v2714_v56  ;;  %v1055_v9 = vrot.slane %v1026_v44, %v2766_v32 }
 0x3cc   : > { %v1068_v51 = vsub.f32 %v2772_v50, %v1031_v45  ;;  %v1069_v52 = vsub.f32 %v2775_v53, %v1035_v46  ;;  %v1070_v59 = vsub.f32 %v2780_v58, %v1039_v49  ;;  %v1071_v2 = vsub.f32 %v2778_v36, %v1043_v57 }
 0x3cd   : > { %v1072_v8 = vsub.f32 %v2786_v63, %v1047_v1  ;;  %v1073_v58 = vsub.f32 %v2784_v61, %v1051_v0  ;;  %v1059_v36 = vrot.slane %v1026_v44, %v2763_v31  ;;  %v1074_v14 = vsub.f32 %v2790_v3, %v1055_v9 }
 0x3ce   : > { %v1076_v54 = vmul.f32 1.442695, %v1068_v51  ;;  %v1078_v62 = vmul.f32 1.442695, %v1069_v52  ;;  %v1080_v4 = vmul.f32 1.442695, %v1070_v59 }
 0x3cf   : > { %v1082_v50 = vmul.f32 1.442695, %v1071_v2  ;;  %v1084_v11 = vmul.f32 1.442695, %v1072_v8  ;;  %v1086_v15 = vmul.f32 1.442695, %v1073_v58  ;;  %v1075_v63 = vsub.f32 %v2793_v6, %v1059_v36 }
 0x3d0   : > { %1907 = vpow2.f32 %v1076_v54  ;;  %v1088_v17 = vmul.f32 1.442695, %v1074_v14 }
 0x3d1   : > { %1909 = vpow2.f32 %v1078_v62  ;;  %v1090_v61 = vmul.f32 1.442695, %v1075_v63 }
 0x3d2   : > { %1911 = vpow2.f32 %v1080_v4 }
 0x3d3   : > { %1913 = vpow2.f32 %v1082_v50 }
 0x3d4   : > { %1915 = vpow2.f32 %v1084_v11 }
 0x3d5   : > { %1917 = vpow2.f32 %v1086_v15 }
 0x3d6   : > { %1919 = vpow2.f32 %v1088_v17 }
 0x3d7   : > { %1921 = vpow2.f32 %v1090_v61 }
 0x3da   : > { %v1908_v53 = vpop.eup %1907 }
 0x3db   : > { %1101 = vperm.xlu0 %1889, %v1908_v53   ;;  %v1910_v13 = vpop.eup %1909 }
 0x3dc   : > { %v1912_v16 = vpop.eup %1911 }
 0x3dd   : > { %v1914_v18 = vpop.eup %1913 }
 0x3de   : > { %v1916_v19 = vpop.eup %1915 }
 0x3df   : > { %1104 = vperm.xlu0 %1889, %v1910_v13   ;;  %v1918_v12 = vpop.eup %1917 }
 0x3e0   : > { %v1920_v20 = vpop.eup %1919 }
 0x3e1   : > { %v1922_v3 = vpop.eup %1921 }
 0x3e3   : > { %1107 = vperm.xlu0 %1889, %v1912_v16  }
 0x3e7   : > { %1110 = vperm.xlu0 %1889, %v1914_v18  }
 0x3eb   : > { %1113 = vperm.xlu0 %1889, %v1916_v19  }
 0x3ef   : > { %1116 = vperm.xlu0 %1889, %v1918_v12  }
 0x3f3   : > { %1119 = vperm.xlu0 %1889, %v1920_v20  }
 0x3f7   : > { %1122 = vperm.xlu0 %1889, %v1922_v3  }
 0x45a   : > { %v1102_v21 = vpop.permute.xlu0 %1101 }
 0x45b   : > { %v1127_v30 = vrot.slane %v1102_v21, %v2802_v10 }
 0x45e   : > { %v1105_v22 = vpop.permute.xlu0 %1104 }
 0x45f   : > { %v1131_v26 = vrot.slane %v1105_v22, %v2802_v10 }
 0x461   : > { %v1156_v42 = vsel %vm1008_vm1, %v1131_v26, %v1127_v30 }
 0x462   : > { %v1108_v23 = vpop.permute.xlu0 %1107 }
 0x463   : > { %v1135_v29 = vrot.slane %v1108_v23, %v2802_v10 }
 0x465   : > { %v1157_v44 = vsel %vm1010_vm2, %v1135_v29, %v1156_v42 }
 0x466   : > { %v1111_v24 = vpop.permute.xlu0 %1110 }
 0x467   : > { %v1139_v34 = vrot.slane %v1111_v24, %v2802_v10 }
 0x469   : > { %v1158_v46 = vsel %vm1012_vm3, %v1139_v34, %v1157_v44 }
 0x46a   : > { %v1114_v6 = vpop.permute.xlu0 %1113 }
 0x46b   : > { %v1143_v38 = vrot.slane %v1114_v6, %v2802_v10 }
 0x46d   : > { %v1159_v49 = vsel %vm1014_vm4, %v1143_v38, %v1158_v46 }
 0x46e   : > { %v1117_v25 = vpop.permute.xlu0 %1116 }
 0x46f   : > { %v1147_v43 = vrot.slane %v1117_v25, %v2802_v10 }
 0x471   : > { %v1160_v52 = vsel %vm1016_vm5, %v1147_v43, %v1159_v49 }
 0x472   : > { %v1120_v41 = vpop.permute.xlu0 %1119 }
 0x473   : > { %v1151_v45 = vrot.slane %v1120_v41, %v2802_v10 }
 0x475   : > { %v1161_v57 = vsel %vm1018_vm6, %v1151_v45, %v1160_v52 }
 0x476   : > { %v1123_v51 = vpop.permute.xlu0 %1122 }
 0x477   : > { %v1155_v54 = vrot.slane %v1123_v51, %v2802_v10 }
 0x479   : > { %v1162_v59 = vsel %vm1020_vm7, %v1155_v54, %v1161_v57 }
 0x47a   : > { %v1164_v62 = vsel %vm1023_vm8, %v1162_v59, 0.0 }
 0x47b   : > { %1165 = vadd.xlane.f32.xlu0 %v1164_v62 }
 0x508   : > { %v1166_v1 = vpop.xlane.xlu0 %1165 }
 0x509   : > { %1923 = vrcp.f32 %v1166_v1 }
 0x513   : > { %v1924_v2 = vpop.eup %1923 }
 0x514   : > { %v1188_v4 = vrot.slane %v1924_v2, %v2696_v37  ;;  %v1172_v0 = vrot.slane %v1924_v2, %v2684_v28  ;;  %v1176_v9 = vrot.slane %v1924_v2, %v2681_v27  ;;  %v1180_v58 = vrot.slane %v1924_v2, %v2689_v35 }
 0x515   : > { %v1184_v36 = vrot.slane %v1924_v2, %v2706_v47  ;;  %v1192_v28 = vrot.slane %v1924_v2, %v2714_v56  ;;  %v1200_v35 = vrot.slane %v1924_v2, %v2763_v31 }
 0x516   : > { %v1213_v8 = vmul.f32 %v1916_v19, %v1188_v4  ;;  %v1209_v50 = vmul.f32 %v1908_v53, %v1172_v0  ;;  %v1210_v10 = vmul.f32 %v1910_v13, %v1176_v9  ;;  %v1211_v11 = vmul.f32 %v1912_v16, %v1180_v58 }
 0x517   : > { %v1212_v37 = vmul.f32 %v1914_v18, %v1184_v36  ;;  %v1214_v27 = vmul.f32 %v1918_v12, %v1192_v28  ;;  %v1196_v53 = vrot.slane %v1924_v2, %v2766_v32  ;;  %v1216_v14 = vmul.f32 %v1922_v3, %v1200_v35 }
 0x518   : > { %1239 = vperm.xlu0 %1889, %v1213_v8   ;;  %1219 = vperm.xlu1 %1890, %v1209_v50  }
 0x519   : > { %v1215_v13 = vmul.f32 %v1920_v20, %v1196_v53 }
 0x51c   : > { %1224 = vperm.xlu1 %1890, %v1210_v10  }
 0x520   : > { %1229 = vperm.xlu1 %1890, %v1211_v11  }
 0x524   : > { %1234 = vperm.xlu1 %1890, %v1212_v37  }
 0x528   : > { %1244 = vperm.xlu1 %1890, %v1214_v27  }
 0x52c   : > { %1249 = vperm.xlu1 %1890, %v1215_v13  }
 0x530   : > { %1254 = vperm.xlu1 %1890, %v1216_v14  }
 0x531   : > { %2168 = shalt.err (!%p2165_p3)
}
 0x532   : > { %s2169_s11 = scalar_lea.hbm %s2868_s20, 128  ;;  %s2173_s16 = scalar_lea.hbm %s3021_s23, 256 }
 0x533   : > { %p2170_p11 = scmp.ne.s32.totalorder %s2868_s20, %s2169_s11  ;;  %p2174_p9 = scmp.lt.u32.totalorder %s2868_s20, %s3021_s23 }
 0x534   : > { %p2175_p6 = scmp.lt.u32.totalorder %s2173_s16, %s2169_s11  ;;  %p2177_p1 = scmp.lt.u32.totalorder %s2169_s11, %s2868_s20 }
 0x535   : > { %p2171_p0 = pnand %p2170_p11, %p3022_p5 }
 0x536   : > { %p2176_p13 = por %p2175_p6, %p2174_p9 }
 0x537   : > { %p2172_p7 = pneg %p2171_p0 }
 0x538   : > { %p2178_p8 = por %p2177_p1, %p2176_p13 }
 0x53a   : > { %p2179_p10 = pnand %p2178_p8, %p2172_p7 }
 0x53c   : > { %2182 = shalt.err (!%p2179_p10)
}
 0x53d   : > { %1796 = dma.vmem_to_hbm [thread:$0]  (%p3022_p5), %s1365_s19, 128, %s2868_s20, %s1338_s5  }
 0x53e   : > { %s492_s13 = scalar_lea.vmem [#allocation16], %s2645_s8  ;;  %s3023_s14 = sld [smem:[#allocation34_spill]] }
 0x53f   : > { %s1351_s30 = sshll.u32 %s492_s13, 4  ;;  %s1333_s8 = scalar_lea.sflag [#allocation4], %s2642_s22  ;;  %s2911_s30 = int_to_ptr.vmem [resolvable:$true] %s1351_s30 }
 0x540   : > { %s2183_s19 = scalar_lea.vmem %s2911_s30, 128  ;;  %s2288_s15 = smov [#allocation16]  }
 0x541   : > { %p2184_p4 = scmp.ne.s32.totalorder %s2911_s30, %s2183_s19  ;;  %s2187_s5 = sshll.u32 %s2288_s15, 4  ;;  %s2188_s5 = int_to_ptr.vmem [resolvable:$false] %s2187_s5 }
 0x542   : > { %s2189_s25 = scalar_lea.vmem %s2188_s5, 256  ;;  %p2190_p3 = scmp.lt.s32.totalorder %s2911_s30, %s2188_s5 }
 0x543   : > { %p2185_p12 = pnand %p2184_p4, %p3022_p5  ;;  %p2191_p11 = scmp.lt.s32.totalorder %s2189_s25, %s2183_s19 }
 0x544   : > { %s2909_s20 = scalar_lea.hbm %s3023_s14, %s1588_s21 }
 0x545   : > { %p2186_p2 = pneg %p2185_p12  ;;  %p2192_p0 = por %p2191_p11, %p2190_p3 }
 0x547   : > { %p2193_p7 = pnand %p2192_p0, %p2186_p2 }
 0x597   : > { %v1220_v47 = vpop.permute.xlu1 %1219  ;;  %v1240_v15 = vpop.permute.xlu0 %1239 }
 0x598   : > { %v1257_v56 = vmul.f32 %v1220_v47, %v2730_v33  ;;  %v1261_v61 = vmul.f32 %v1240_v15, %v2749_v60 }
 0x59a   : > { %v1265_v63 = vrot.slane %v1257_v56, 4  ;;  %v1289_v22 = vrot.slane %v1261_v61, 4 }
 0x59b   : > { %v1225_v31 = vpop.permute.xlu1 %1224 }
 0x59c   : > { %v1258_v32 = vmul.f32 %v1225_v31, %v2733_v39  ;;  %v1266_v20 = vadd.f32 %v1265_v63, %v1257_v56  ;;  %v1290_v29 = vadd.f32 %v1289_v22, %v1261_v61 }
 0x59e   : > { %v1271_v16 = vrot.slane %v1258_v32, 4  ;;  %v1267_v24 = vrot.slane %v1266_v20, 2  ;;  %v1291_v45 = vrot.slane %v1290_v29, 2 }
 0x59f   : > { %v1230_v17 = vpop.permute.xlu1 %1229 }
 0x5a0   : > { %v1259_v18 = vmul.f32 %v1230_v17, %v2735_v40  ;;  %v1272_v19 = vadd.f32 %v1271_v16, %v1258_v32  ;;  %v1268_v60 = vadd.f32 %v1267_v24, %v1266_v20  ;;  %v1292_v2 = vadd.f32 %v1291_v45, %v1290_v29 }
 0x5a2   : > { %v1277_v12 = vrot.slane %v1259_v18, 4  ;;  %v1273_v33 = vrot.slane %v1272_v19, 2  ;;  %v1269_v52 = vrot.slane %v1268_v60, 1  ;;  %v1293_v36 = vrot.slane %v1292_v2, 1 }
 0x5a3   : > { %v1235_v3 = vpop.permute.xlu1 %1234 }
 0x5a4   : > { %v1278_v21 = vadd.f32 %v1277_v12, %v1259_v18  ;;  %v1260_v23 = vmul.f32 %v1235_v3, %v2739_v48  ;;  %v1274_v40 = vadd.f32 %v1273_v33, %v1272_v19  ;;  %v1270_v50 = vadd.f32 %v1269_v52, %v1268_v60 }
 0x5a5   : > { %v1294_v14 = vadd.f32 %v1293_v36, %v1292_v2 }
 0x5a6   : > { %v1279_v6 = vrot.slane %v1278_v21, 2  ;;  %v1283_v39 = vrot.slane %v1260_v23, 4  ;;  %v1275_v46 = vrot.slane %v1274_v40, 1 }
 0x5a7   : > { %v1245_v25 = vpop.permute.xlu1 %1244 }
 0x5a8   : > { %v1262_v26 = vmul.f32 %v1245_v25, %v2745_v55  ;;  %v1284_v30 = vadd.f32 %v1283_v39, %v1260_v23  ;;  %v1280_v38 = vadd.f32 %v1279_v6, %v1278_v21  ;;  %v1276_v4 = vadd.f32 %v1275_v46, %v1274_v40 }
 0x5aa   : > { %v1295_v34 = vrot.slane %v1262_v26, 4  ;;  %v1285_v41 = vrot.slane %v1284_v30, 2  ;;  %v1281_v54 = vrot.slane %v1280_v38, 1  ;;  %v1321_v37 = vsel %vm1008_vm1, %v1276_v4, %v1270_v50 }
 0x5ab   : > { %v1250_v42 = vpop.permute.xlu1 %1249 }
 0x5ac   : > { %v1296_v43 = vadd.f32 %v1295_v34, %v1262_v26  ;;  %v1263_v44 = vmul.f32 %v1250_v42, %v2758_v7  ;;  %v1286_v48 = vadd.f32 %v1285_v41, %v1284_v30  ;;  %v1282_v9 = vadd.f32 %v1281_v54, %v1280_v38 }
 0x5ae   : > { %v1297_v49 = vrot.slane %v1296_v43, 2  ;;  %v1301_v51 = vrot.slane %v1263_v44, 4  ;;  %v1287_v55 = vrot.slane %v1286_v48, 1  ;;  %v1322_v53 = vsel %vm1010_vm2, %v1282_v9, %v1321_v37 }
 0x5af   : > { %v1255_v57 = vpop.permute.xlu1 %1254 }
 0x5b0   : > { %v1298_v59 = vadd.f32 %v1297_v49, %v1296_v43  ;;  %v1302_v62 = vadd.f32 %v1301_v51, %v1263_v44  ;;  %v1264_v1 = vmul.f32 %v1255_v57, %v2755_v5  ;;  %v1288_v7 = vadd.f32 %v1287_v55, %v1286_v48 }
 0x5b2   : > { %v1303_v0 = vrot.slane %v1302_v62, 2  ;;  %v1307_v8 = vrot.slane %v1264_v1, 4  ;;  %v1299_v10 = vrot.slane %v1298_v59, 1  ;;  %v1323_v5 = vsel %vm1012_vm3, %v1288_v7, %v1322_v53 }
 0x5b3   : > { %v1324_v31 = vsel %vm1014_vm4, %v1294_v14, %v1323_v5 }
 0x5b4   : > { %v1304_v58 = vadd.f32 %v1303_v0, %v1302_v62  ;;  %v1308_v11 = vadd.f32 %v1307_v8, %v1264_v1  ;;  %v1300_v13 = vadd.f32 %v1299_v10, %v1298_v59 }
 0x5b6   : > { %v1305_v28 = vrot.slane %v1304_v58, 1  ;;  %v1309_v27 = vrot.slane %v1308_v11, 2  ;;  %v1325_v32 = vsel %vm1016_vm5, %v1300_v13, %v1324_v31 }
 0x5b8   : > { %v1310_v35 = vadd.f32 %v1309_v27, %v1308_v11  ;;  %v1306_v47 = vadd.f32 %v1305_v28, %v1304_v58 }
 0x5ba   : > { %v1311_v56 = vrot.slane %v1310_v35, 1  ;;  %v1326_v16 = vsel %vm1018_vm6, %v1306_v47, %v1325_v32 }
 0x5bc   : > { %v1312_v15 = vadd.f32 %v1311_v56, %v1310_v35 }
 0x5be   : > { %v1327_v63 = vsel %vm1020_vm7, %v1312_v15, %v1326_v16 }
 0x5bf   : > { %1329 = vst [vmem:[%s492_s13] sm:$0xff] %v1327_v63 }
 0x5c0   : > { %2196 = shalt.err (!%p2193_p7)
}
 0x5c1   : > { %s2197_s22 = scalar_lea.hbm %s2909_s20, 128  ;;  %s2201_s9 = scalar_lea.hbm %s3023_s14, 256 }
 0x5c2   : > { %p2198_p9 = scmp.ne.s32.totalorder %s2909_s20, %s2197_s22  ;;  %p2202_p1 = scmp.lt.u32.totalorder %s2909_s20, %s3023_s14 }
 0x5c3   : > { %p2203_p8 = scmp.lt.u32.totalorder %s2201_s9, %s2197_s22  ;;  %p2205_p4 = scmp.lt.u32.totalorder %s2197_s22, %s2909_s20 }
 0x5c4   : > { %p2199_p6 = pnand %p2198_p9, %p3022_p5 }
 0x5c5   : > { %p2204_p10 = por %p2203_p8, %p2202_p1 }
 0x5c6   : > { %p2200_p13 = pneg %p2199_p6 }
 0x5c7   : > { %p2206_p12 = por %p2205_p4, %p2204_p10 }
 0x5c9   : > { %p2207_p2 = pnand %p2206_p12, %p2200_p13 }
 0x5cb   : > { %2210 = shalt.err (!%p2207_p2)
}
 0x5cc   : > { %1795 = dma.vmem_to_hbm [thread:$0]  (%p3022_p5), %s2911_s30, 128, %s2909_s20, %s1333_s8  }
 0x5cd PF: > { %s3024_s24 = sld [smem:[#allocation26_spill]]  ;;  %s3025_s3 = sld [smem:[#allocation30_spill]] }
 0x5ce   : > { %p3027_p11 = scmp.ge.s32.totalorder %s2269_s12, 2 }
 0x5d3   : > { %s1376_s16 = sand.u32 1, %s3024_s24   ;;  %p3026_p3 = scmp.ne.s32.totalorder %s3025_s3, 0 }
 0x5d4   : > { %s1377_s26 = scalar_lea.sflag [#allocation4], %s1376_s16 }
 0x5d5   : > { %p1826_p0 = pnand %p3027_p11, %p3026_p3 }
 0x5d7   : > { %2248 = dma.done.wait (!%p1826_p0), %s1377_s26, 128  }
 0x5d8   : > { %2250 = vsyncadd (!%p1826_p0), %s1377_s26, 4294967168  ;;  %s1386_s17 = scalar_lea.sflag [#allocation18], %s1376_s16 }
 0x5d9   : > { %2252 = dma.done.wait (!%p1826_p0), %s1386_s17, 128  }
 0x5da   : > { %2254 = vsyncadd (!%p1826_p0), %s1386_s17, 4294967168  ;;  %s3028_s12 = sld [smem:[#allocation28_spill]]  ;;  %s3029_s28 = sld [smem:[#allocation27_spill]] }
 0x5db   : > { %s3030_s11 = sld [smem:[#allocation29_spill]]  ;;  %s3031_s30 = smov %s2261_s10 }
 0x5e0   : > { %p32_p5 = scmp.ge.s32.totalorder %s3028_s12, 4   ;;  %s3032_s10 = smov %s3029_s28 }
 0x5e2   :  { %34 = sbr.rel (!%p32_p5) target bundleno = 18 (0x12), region = 158 }
 0x5e9   :  { %1391 = vsyncpa [#allocation3], 1 }
 0x5ea   :  { %1393 = vsyncpa [#allocation3 + $0x1], 1 }
 0x5eb   :  { %1394 = vsyncpa [#allocation6], 1 }
 0x5ec   :  { %1396 = vsyncpa [#allocation6 + $0x1], 1 }
 0x5ed   :  { %1397 = vsyncpa [#allocation9], 1 }
 0x5ee   :  { %1398 = vsyncpa [#allocation12], 1 }
 0x5ef   :  { %1399 = vsyncpa [#allocation15], 1 }
 0x5f0   :  { %1400 = vsyncpa [#allocation4], 1 }
 0x5f1   :  { %1402 = vsyncpa [#allocation4 + $0x1], 1 }
 0x5f2   :  { %1403 = vsyncpa [#allocation18], 1 }
 0x5f3   :  { %1405 = vsyncpa [#allocation18 + $0x1], 1 }

</bundles_post_ra>
